<compile_context>
chip_gen: v5e
topology: v5e:2x2
jax: 0.10.0
libtpu: 0.0.40
codegen_flags: <defaults>
</compile_context>

<pallas_src>
import jax
import jax.numpy as jnp
from jax.experimental import pallas as pl
from jax.experimental.pallas import tpu as pltpu


def sa_pe_kernel(pos_ref, w_ref, x_ref, out_ref):
    # pos_ref : (B, K)   resident across the grid (constant index_map);
    #                    K = I + 1 (+pad) — the constant-1 column multiplies the
    #                    embedding row folded into the weight.
    # w_ref   : (K, TN)  column tile of the augmented, pre-cast weight.
    # x_ref   : (B, TN)  column tile of the flattened input x.
    # out_ref : (B, TN)
    em = jnp.dot(pos_ref[...], w_ref[...], preferred_element_type=jnp.float32)
    em = jnp.clip(em, -1.0, 1.0)                      # F.hardtanh
    out_ref[...] = (x_ref[...].astype(jnp.float32) + em).astype(out_ref.dtype)


def prepare_sa_pe_params(linear, embedding_parameter, compute_dtype=jnp.bfloat16):
    """One-time parameter prep (hoisted out of the per-call path).

    Flattens (I, D, J) -> (I, D*J), folds the embedding in as one extra weight
    row, zero-pads K to a multiple of 8 and N to a multiple of 128, and casts
    to `compute_dtype` (the dominant HBM stream). Pass jnp.float32 for
    bit-matched full-precision semantics.
    """
    I, D, J = linear.shape
    N = D * J
    N_pad = pl.cdiv(N, 128) * 128
    K = I + 1
    K_pad = pl.cdiv(K, 8) * 8
    w_aug = jnp.concatenate(
        [linear.reshape(I, N), embedding_parameter.reshape(1, N)], axis=0)
    w_aug = jnp.pad(w_aug, ((0, K_pad - K), (0, N_pad - N)))
    w_aug = w_aug.astype(compute_dtype)
    meta = dict(I=I, D=D, J=J, N=N, N_pad=N_pad, K=K, K_pad=K_pad)
    return w_aug, meta


def _choose_tile(N_pad, K_pad, B, *, w_itemsize, x_itemsize, out_itemsize,
                 vmem_budget_bytes):
    """Pick the lane-tile width TN (multiple of 128 dividing N_pad) and grid length."""
    # Double-buffered per-column footprint: weight tile + x tile + out tile.
    per_col = 2 * (K_pad * w_itemsize + B * (x_itemsize + out_itemsize))
    tn_vmem = max(128, (vmem_budget_bytes // per_col) // 128 * 128)

    # Small-problem fast path: everything in one latency-optimal step.
    if N_pad <= tn_vmem:
        return N_pad, 1

    # Otherwise: largest multiple-of-128 divisor of N_pad that fits VMEM and
    # gives >= 4 grid steps (>= 2 pipelined steps per TensorCore on v7x).
    divisors = [d for d in range(128, N_pad + 1, 128) if N_pad % d == 0]
    fitting = [d for d in divisors if d <= tn_vmem] or [128]
    deep = [d for d in fitting if N_pad // d >= 4]
    tn = max(deep) if deep else max(fitting)
    return tn, N_pad // tn


def sa_pe_forward(x, pos, w_aug, meta, *, vmem_budget_bytes=12 << 20):
    """x: (B, D, J), pos: (B, I); w_aug/meta from prepare_sa_pe_params."""
    B, D, J = x.shape
    N, N_pad = meta["N"], meta["N_pad"]
    K, K_pad = meta["K"], meta["K_pad"]
    assert (D, J) == (meta["D"], meta["J"])
    assert pos.shape == (B, meta["I"])

    # Tiny per-call prep: augmented pos (constant-1 column picks up the folded
    # embedding row), padded to K_pad, cast to the weight dtype.
    ones = jnp.ones((B, 1), dtype=pos.dtype)
    pos_aug = jnp.concatenate([pos, ones], axis=1)
    pos_aug = jnp.pad(pos_aug, ((0, 0), (0, K_pad - K))).astype(w_aug.dtype)

    x_flat = x.reshape(B, N)
    if N_pad != N:
        x_flat = jnp.pad(x_flat, ((0, 0), (0, N_pad - N)))

    tn, grid_len = _choose_tile(
        N_pad, K_pad, B,
        w_itemsize=jnp.dtype(w_aug.dtype).itemsize,
        x_itemsize=jnp.dtype(x.dtype).itemsize,
        out_itemsize=jnp.dtype(x.dtype).itemsize,
        vmem_budget_bytes=vmem_budget_bytes,
    )

    out_flat = pl.pallas_call(
        sa_pe_kernel,
        out_shape=jax.ShapeDtypeStruct((B, N_pad), x.dtype),
        grid_spec=pl.GridSpec(
            grid=(grid_len,),
            in_specs=[
                pl.BlockSpec((B, K_pad), lambda j: (0, 0)),    # pos (resident)
                pl.BlockSpec((K_pad, tn), lambda j: (0, j)),   # weight column tile
                pl.BlockSpec((B, tn), lambda j: (0, j)),       # x tile
            ],
            out_specs=pl.BlockSpec((B, tn), lambda j: (0, j)),
        ),
        compiler_params=pltpu.CompilerParams(
            dimension_semantics=("parallel",),
            vmem_limit_bytes=int(vmem_budget_bytes) + (4 << 20),
        ),
    )(pos_aug, w_aug, x_flat)

    if N_pad != N:
        out_flat = out_flat[:, :N]
    return out_flat.reshape(B, D, J)


def sa_pe_reference(x, pos, linear, embedding_parameter):
    em = jnp.einsum('bi,idj->bdj', pos, linear)
    em = em + embedding_parameter
    em = jnp.clip(em, -1.0, 1.0)
    return x + em


if __name__ == "__main__":
    # Small-but-consistent shapes: d_model=128, max_len=16, batch=2.
    d_model, max_len, B = 128, 16, 2
    I = d_model * 2

    key = jax.random.PRNGKey(0)
    k1, k2, k3, k4 = jax.random.split(key, 4)

    # Parameters (PyTorch inits embedding to zeros; use a small nonzero value
    # here so the folded-in embedding add is actually exercised by the test).
    linear = 0.005 * jax.random.normal(k1, (I, max_len, d_model), jnp.float32)
    embedding_parameter = 0.01 * jax.random.normal(
        k2, (1, max_len, d_model), jnp.float32)

    # Inputs.
    x = jax.random.normal(k3, (B, max_len, d_model), jnp.float32)
    pos = jax.random.normal(k4, (B, I), jnp.float32)

    # One-time parameter prep (cast / fold / pad hoisted out of the call path).
    w_bf16, meta_bf16 = prepare_sa_pe_params(linear, embedding_parameter,
                                             compute_dtype=jnp.bfloat16)
    w_f32, meta_f32 = prepare_sa_pe_params(linear, embedding_parameter,
                                           compute_dtype=jnp.float32)

    ref = sa_pe_reference(x, pos, linear, embedding_parameter)

    out = jax.block_until_ready(sa_pe_forward(x, pos, w_bf16, meta_bf16))
    assert out.shape == (B, max_len, d_model)
    # Tolerance accounts for the bf16 weight/pos stream (f32 accumulation);
    # the em term is O(0.1) so bf16 rounding contributes < ~1e-3 absolute.
    assert jnp.allclose(out, ref, atol=3e-3, rtol=1e-3), "bf16-weight mismatch"

    # Full-precision weight path should match tightly.
    out_f32 = jax.block_until_ready(sa_pe_forward(x, pos, w_f32, meta_f32))
    assert jnp.allclose(out_f32, ref, atol=1e-5, rtol=1e-5), "f32 mismatch"

    print("KERNEL_OK")
</pallas_src>

<mosaic_0001>
module attributes {stable_mosaic.version = 11 : i64} {
  func.func @sa_pe_kernel(%arg0: i32, %arg1: memref<2x264xbf16, #tpu.memory_space<vmem>>, %arg2: memref<264x2048xbf16, #tpu.memory_space<vmem>>, %arg3: memref<2x2048xf32, #tpu.memory_space<vmem>>, %arg4: memref<2x2048xf32, #tpu.memory_space<vmem>>) attributes {dimension_semantics = [#tpu.dimension_semantics<parallel>], iteration_bounds = array<i64: 1>, scalar_prefetch = 0 : i64, scratch_operands = 0 : i64, tpu.core_type = #tpu.core_type<tc>, window_params = [{pipeline_mode = #tpu.pipeline_mode<synchronous>, transform_indices = @transform_0, window_bounds = array<i64: 2, 264>}, {transform_indices = @transform_1, window_bounds = array<i64: 264, 2048>}, {transform_indices = @transform_2, window_bounds = array<i64: 2, 2048>}, {transform_indices = @transform_3, window_bounds = array<i64: 2, 2048>}]} {
    %c0 = arith.constant 0 : index
    %c0_0 = arith.constant 0 : index
    %0 = vector.load %arg1[%c0, %c0_0] : memref<2x264xbf16, #tpu.memory_space<vmem>>, vector<2x264xbf16>
    %c0_1 = arith.constant 0 : index
    %c0_2 = arith.constant 0 : index
    %1 = vector.load %arg2[%c0_1, %c0_2] : memref<264x2048xbf16, #tpu.memory_space<vmem>>, vector<264x2048xbf16>
    %cst = arith.constant dense<0.000000e+00> : vector<2x2048xf32>
    %2 = tpu.matmul %0, %1, %cst {dimension_numbers = #tpu.dot_dimension_numbers<[1], [0], [0], [1], [0, 0, 1, 1], [], []>} : vector<2x264xbf16>, vector<264x2048xbf16>, vector<2x2048xf32> -> vector<2x2048xf32>
    %cst_3 = arith.constant -1.000000e+00 : f32
    %cst_4 = arith.constant 1.000000e+00 : f32
    %3 = vector.broadcast %cst_3 : f32 to vector<2x2048xf32>
    %4 = arith.maximumf %3, %2 : vector<2x2048xf32>
    %5 = vector.broadcast %cst_4 : f32 to vector<2x2048xf32>
    %6 = arith.minimumf %5, %4 : vector<2x2048xf32>
    %c0_5 = arith.constant 0 : index
    %c0_6 = arith.constant 0 : index
    %7 = vector.load %arg3[%c0_5, %c0_6] : memref<2x2048xf32, #tpu.memory_space<vmem>>, vector<2x2048xf32>
    %8 = arith.addf %7, %6 : vector<2x2048xf32>
    %c0_7 = arith.constant 0 : index
    %c0_8 = arith.constant 0 : index
    %9 = vector.load %arg4[%c0_7, %c0_8] : memref<2x2048xf32, #tpu.memory_space<vmem>>, vector<2x2048xf32>
    tpu.vector_store %arg4[%c0_7, %c0_8], %8 {strides = array<i32>} : memref<2x2048xf32, #tpu.memory_space<vmem>>, vector<2x2048xf32>,
    return
  }
  func.func @transform_0(%arg0: i32) -> (i32, i32) {
    %c0_i32 = arith.constant 0 : i32
    %c0_i32_0 = arith.constant 0 : i32
    %c0_i32_1 = arith.constant 0 : i32
    return %c0_i32, %c0_i32_0 : i32, i32
  }
  func.func @transform_1(%arg0: i32) -> (i32, i32) {
    %c0_i32 = arith.constant 0 : i32
    %c0_i32_0 = arith.constant 0 : i32
    return %c0_i32, %arg0 : i32, i32
  }
  func.func @transform_2(%arg0: i32) -> (i32, i32) {
    %c0_i32 = arith.constant 0 : i32
    %c0_i32_0 = arith.constant 0 : i32
    return %c0_i32, %arg0 : i32, i32
  }
  func.func @transform_3(%arg0: i32) -> (i32, i32) {
    %c0_i32 = arith.constant 0 : i32
    %c0_i32_0 = arith.constant 0 : i32
    return %c0_i32, %arg0 : i32, i32
  }
}

</mosaic_0001>

<bundles_post_ra>
// kernel: tpu_custom_call.1
= control target key start
LH: loop header
LB: loop body
LE: loop exit
PB: predicated region body
PF: predicated region fallthrough
CT: control target
= control target key end

     0   :  { %8 = vsyncpa [#allocation3], 0  ;;  %s4068_s0 = inlined_call_operand.hbm [shape: bf16[2,264], index: 0, kind: input, shape index: {}]   ;;  %s4069_s1 = inlined_call_operand.hbm [shape: bf16[264,2048], index: 1, kind: input, shape index: {}]   ;;  %s4070_s2 = inlined_call_operand.hbm [shape: f32[2,2048], index: 2, kind: input, shape index: {}]   ;;  %s4071_s3 = inlined_call_operand.hbm [shape: f32[2,2048], index: 3, kind: output, shape index: {}]  }
   0x1   :  { %9 = vsyncpa [#allocation6], 0  ;;  %s26_s14 = sshll.u32 %s4069_s1, 4  ;;  %s27_s14 = int_to_ptr.hbm [resolvable:$true] %s26_s14 }
   0x2   :  { %10 = vsyncpa [#allocation4], 0  ;;  %s3859_s15 = smov [#allocation5]   ;;  %s16_s19 = sshll.u32 %s4068_s0, 4  ;;  %s17_s19 = int_to_ptr.hbm [resolvable:$true] %s16_s19 }
   0x3   :  { %s28_s16 = sshll.u32 %s3859_s15, 4  ;;  %s3860_s20 = smov 1024   ;;  %s29_s16 = int_to_ptr.vmem [resolvable:$true] %s28_s16 }
   0x4   :  { %s3861_s21 = smov 64   ;;  %s3862_s22 = smov [#allocation2]  }
   0x5   :  { %34 = dma.hbm_to_vmem [thread:$0]  %s27_s14, 33792, %s29_s16, [#allocation6], %s3860_s20, %s3860_s20, %s3861_s21  }
   0x6   :  { %s18_s23 = sshll.u32 %s3862_s22, 4  ;;  %s40_s26 = sshll.u32 %s4070_s2, 4  ;;  %s19_s23 = int_to_ptr.vmem [resolvable:$true] %s18_s23  ;;  %s41_s26 = int_to_ptr.hbm [resolvable:$true] %s40_s26 }
   0x7   :  { %21 = dma.hbm_to_vmem [thread:$0]  %s17_s19, 48, %s19_s23, [#allocation3]  }
   0x8   :  { %s3863_s1 = smov [#allocation7]  }
   0x9   :  { %s42_s27 = sshll.u32 %s3863_s1, 4  ;;  %s43_s27 = int_to_ptr.vmem [resolvable:$true] %s42_s27 }
   0xa   :  { %45 = dma.hbm_to_vmem [thread:$0]  %s41_s26, 512, %s43_s27, [#allocation6]  }
   0xb   :  { %3853 = dma.done.wait [#allocation3], 48  }
   0xc   :  { %3854 = vsyncadd [#allocation3], 4294967248 }
   0xd   :  { %3855 = dma.done.wait [#allocation6], 34304  }
   0xe   :  { %3856 = vsyncadd [#allocation6], 4294932992  ;;  %v2885_v0 = vld [vmem:[#allocation5 + $0x380] sm:$0xf]  ;;  %v3731_v5 = vld [vmem:[#allocation5 + $0x784] sm:$0xf] }
   0xf   :  { %v3611_v1 = vld [vmem:[#allocation5 + $0x3bc] sm:$0xf0]  ;;  %v3399_v6 = vld [vmem:[#allocation5 + $0x7c0] sm:$0xf0]  ;;  %vm1654_vm0 = vcmask 1043456   ;;  %vm1651_vm1 = vcmask 64512  }
  0x10   :  { %v3397_v2 = vld [vmem:[#allocation5 + $0x780] sm:$0xf]  ;;  %v2886_v3 = vor.u32 %v3611_v1, %v2885_v0  ;;  %v3402_v8 = vor.u32 %v3731_v5, %v3399_v6  ;;  %v3603_v16 = vld [vmem:[#allocation5 + $0x384] sm:$0xf]  ;;  %v59_v62 = vld [vmem:[#allocation2] sm:$0x7] }
  0x11   :  { %v3739_v4 = vld [vmem:[#allocation5 + $0x7bc] sm:$0xf0]  ;;  %v2887_v18 = vld [vmem:[#allocation5 + $0x3c0] sm:$0xf0]  ;;  %325 = vst [vmem:[#allocation1] ss:$9 sm:$0xff] %v59_v62 }
  0x12   :  { %v3398_v7 = vor.u32 %v3739_v4, %v3397_v2  ;;  %v3894_v9 = vld [vmem:[#allocation5 + $0x800] sm:$0xff]  ;;  %1703 = vmatpush.bf16.msra.mxu0 %v2886_v3  ;;  %1755 = vmatpush.bf16.msra.mxu2 %v3402_v8  ;;  %v2890_v22 = vor.u32 %v3603_v16, %v2887_v18  ;;  %vm2391_vm2 = vcmask 1041408   ;;  %vm2393_vm3 = vcmask 1045508   ;;  %s3864_s0 = smov [#allocation8]   ;;  %s2424_s30 = sshll.u32 %s4071_s3, 4  ;;  %s2425_s30 = int_to_ptr.hbm [resolvable:$true] %s2424_s30 }
  0x13   :  { %v2821_v10 = vld [vmem:[#allocation5 + $0x300] sm:$0xf]  ;;  %v1107_v12 = vunpack.c.l.b16 %v3894_v9  ;;  %v3715_v19 = vld [vmem:[#allocation5 + $0x704] sm:$0xf]  ;;  %s2422_s2 = sshll.u32 %s3864_s0, 4  ;;  %s2423_s2 = int_to_ptr.vmem [resolvable:$true] %s2422_s2 }
  0x14   :  { %v3595_v11 = vld [vmem:[#allocation5 + $0x33c] sm:$0xf0]  ;;  %1716 = vmatpush.bf16.msra.mxu1 %v3398_v7  ;;  %v3335_v20 = vld [vmem:[#allocation5 + $0x740] sm:$0xf0] }
  0x15   :  { %v2822_v13 = vor.u32 %v3595_v11, %v2821_v10  ;;  %v3333_v14 = vld [vmem:[#allocation5 + $0x700] sm:$0xf]  ;;  %v1379_v21 = vpack.c.b16 %v1107_v12, %v1107_v12  ;;  %v3338_v23 = vor.u32 %v3715_v19, %v3335_v20  ;;  %v3587_v28 = vld [vmem:[#allocation5 + $0x304] sm:$0xf]  ;;  %v3899_v20 = vld [vmem:[#allocation5 + $0x808] sm:$0xff] }
  0x16   :  { %v3723_v15 = vld [vmem:[#allocation5 + $0x73c] sm:$0xf0]  ;;  %v2823_v29 = vld [vmem:[#allocation5 + $0x340] sm:$0xf0] }
  0x17   :  { %v3334_v17 = vor.u32 %v3723_v15, %v3333_v14  ;;  %v2757_v24 = vld [vmem:[#allocation5 + $0x280] sm:$0xf]  ;;  %v1656_v30 = vsel %vm1654_vm0, %v1379_v21, 0  ;;  %1704 = vmatpush.bf16.msra.mxu0 %v2822_v13  ;;  %v3699_v32 = vld [vmem:[#allocation5 + $0x684] sm:$0xf]  ;;  %1756 = vmatpush.bf16.msra.mxu2 %v3338_v23  ;;  %v2826_v37 = vor.u32 %v3587_v28, %v2823_v29 }
  0x18   :  { %v3579_v25 = vld [vmem:[#allocation5 + $0x2bc] sm:$0xf0]  ;;  %v3271_v33 = vld [vmem:[#allocation5 + $0x6c0] sm:$0xf0]  ;;  %1736 = vmatpush.bf16.msra.mxu3 %v1656_v30 }
  0x19   :  { %v3269_v26 = vld [vmem:[#allocation5 + $0x680] sm:$0xf]  ;;  %v2758_v31 = vor.u32 %v3579_v25, %v2757_v24  ;;  %1717 = vmatpush.bf16.msra.mxu1 %v3334_v17  ;;  %v3274_v38 = vor.u32 %v3699_v32, %v3271_v33  ;;  %v3571_v41 = vld [vmem:[#allocation5 + $0x284] sm:$0xf]  ;;  %v1108_v17 = vunpack.c.h.b16 %v3894_v9 }
  0x1a   :  { %v3707_v27 = vld [vmem:[#allocation5 + $0x6bc] sm:$0xf0]  ;;  %v2759_v42 = vld [vmem:[#allocation5 + $0x2c0] sm:$0xf0] }
  0x1b   :  { %v3270_v34 = vor.u32 %v3707_v27, %v3269_v26  ;;  %v2693_v35 = vld [vmem:[#allocation5 + $0x200] sm:$0xf]  ;;  %v3683_v43 = vld [vmem:[#allocation5 + $0x604] sm:$0xf]  ;;  %1705 = vmatpush.bf16.msra.mxu0 %v2758_v31  ;;  %1757 = vmatpush.bf16.msra.mxu2 %v3274_v38  ;;  %v2762_v49 = vor.u32 %v3571_v41, %v2759_v42  ;;  %v1109_v26 = vunpack.c.l.b16 %v3899_v20  ;;  %v1380_v31 = vpack.c.b16 %v1108_v17, %v1108_v17  ;;  %v2895_v41 = vld [vmem:[#allocation5 + $0x3c8] sm:$0xf0] }
  0x1c   :  { %v3563_v36 = vld [vmem:[#allocation5 + $0x23c] sm:$0xf0]  ;;  %1742 = vmatpush.bf16.msrb.mxu3 %v2890_v22  ;;  %v3207_v44 = vld [vmem:[#allocation5 + $0x640] sm:$0xf0]  ;;  %v3564_v17 = vld [vmem:[#allocation5 + $0x244] sm:$0xf0] }
  0x1d   :  { %v3205_v39 = vld [vmem:[#allocation5 + $0x600] sm:$0xf]  ;;  %v2694_v45 = vor.u32 %v3563_v36, %v2693_v35  ;;  %1718 = vmatpush.bf16.msra.mxu1 %v3270_v34  ;;  %v3210_v50 = vor.u32 %v3683_v43, %v3207_v44  ;;  %v3555_v53 = vld [vmem:[#allocation5 + $0x204] sm:$0xf]  ;;  %v2893_v36 = vld [vmem:[#allocation5 + $0x388] sm:$0xf] }
  0x1e   :  { %v3691_v40 = vld [vmem:[#allocation5 + $0x63c] sm:$0xf0]  ;;  %v2695_v54 = vld [vmem:[#allocation5 + $0x240] sm:$0xf0]  ;;  %v3906_v44 = vld [vmem:[#allocation1] sm:$0xff] }
  0x1f   :  { %v3206_v46 = vor.u32 %v3691_v40, %v3205_v39  ;;  %v2629_v47 = vld [vmem:[#allocation5 + $0x180] sm:$0xf]  ;;  %v3667_v55 = vld [vmem:[#allocation5 + $0x584] sm:$0xf]  ;;  %1706 = vmatpush.bf16.msra.mxu0 %v2694_v45  ;;  %1758 = vmatpush.bf16.msra.mxu2 %v3210_v50  ;;  %v2698_v63 = vor.u32 %v3555_v53, %v2695_v54  ;;  %v1381_v39 = vpack.c.b16 %v1109_v26, %v1109_v26  ;;  %v3604_v40 = vld [vmem:[#allocation5 + $0x38c] sm:$0xf] }
  0x20   :  { %v3547_v48 = vld [vmem:[#allocation5 + $0x1bc] sm:$0xf0]  ;;  %1743 = vmatpush.bf16.msrb.mxu3 %v2826_v37  ;;  %v3143_v56 = vld [vmem:[#allocation5 + $0x5c0] sm:$0xf0]  ;;  %v3612_v37 = vld [vmem:[#allocation5 + $0x3c4] sm:$0xf0] }
  0x21   :  { %v3141_v51 = vld [vmem:[#allocation5 + $0x580] sm:$0xf]  ;;  %v2630_v57 = vor.u32 %v3547_v48, %v2629_v47  ;;  %1719 = vmatpush.bf16.msra.mxu1 %v3206_v46  ;;  %v3146_v0 = vor.u32 %v3667_v55, %v3143_v56  ;;  %v3539_v2 = vld [vmem:[#allocation5 + $0x184] sm:$0xf]  ;;  %v1659_v45 = vsel %vm1654_vm0, %v1380_v31, 0  ;;  %v2894_v48 = vor.u32 %v3612_v37, %v2893_v36 }
  0x22   :  { %v3675_v52 = vld [vmem:[#allocation5 + $0x5bc] sm:$0xf0]  ;;  %v2631_v3 = vld [vmem:[#allocation5 + $0x1c0] sm:$0xf0]  ;;  %v3407_v50 = vld [vmem:[#allocation5 + $0x7c8] sm:$0xf0] }
  0x23   :  { %v2565_v58 = vld [vmem:[#allocation5 + $0x100] sm:$0xf]  ;;  %v3142_v59 = vor.u32 %v3675_v52, %v3141_v51  ;;  %v3651_v4 = vld [vmem:[#allocation5 + $0x504] sm:$0xf]  ;;  %1707 = vmatpush.bf16.msra.mxu0 %v2630_v57  ;;  %1759 = vmatpush.bf16.msra.mxu2 %v3146_v0  ;;  %v2634_v12 = vor.u32 %v3539_v2, %v2631_v3  ;;  %v2829_v51 = vld [vmem:[#allocation5 + $0x308] sm:$0xf]  ;;  %v2898_v52 = vor.u32 %v3604_v40, %v2895_v41 }
  0x24   :  { %v3531_v60 = vld [vmem:[#allocation5 + $0x13c] sm:$0xf0]  ;;  %1744 = vmatpush.bf16.msrb.mxu3 %v2762_v49  ;;  %v3079_v5 = vld [vmem:[#allocation5 + $0x540] sm:$0xf0]  ;;  %v3732_v49 = vld [vmem:[#allocation5 + $0x78c] sm:$0xf] }
  0x25   :  { %v3077_v61 = vld [vmem:[#allocation5 + $0x500] sm:$0xf]  ;;  %v2566_v6 = vor.u32 %v3531_v60, %v2565_v58  ;;  %1720 = vmatpush.bf16.msra.mxu1 %v3142_v59  ;;  %v3082_v13 = vor.u32 %v3651_v4, %v3079_v5  ;;  %v3523_v15 = vld [vmem:[#allocation5 + $0x104] sm:$0xf]  ;;  %v3596_v53 = vld [vmem:[#allocation5 + $0x344] sm:$0xf0] }
  0x26   :  { %v3659_v1 = vld [vmem:[#allocation5 + $0x53c] sm:$0xf0]  ;;  %v2567_v16 = vld [vmem:[#allocation5 + $0x140] sm:$0xf0]  ;;  %v3405_v54 = vld [vmem:[#allocation5 + $0x788] sm:$0xf]  ;;  %v2830_v62 = vor.u32 %v3596_v53, %v2829_v51 }
  0x27   :  { %v3078_v7 = vor.u32 %v3659_v1, %v3077_v61  ;;  %v2501_v8 = vld [vmem:[#allocation5 + $0x80] sm:$0xf]  ;;  %v3635_v18 = vld [vmem:[#allocation5 + $0x484] sm:$0xf]  ;;  %1708 = vmatpush.bf16.msra.mxu0 %v2566_v6  ;;  %1760 = vmatpush.bf16.msra.mxu2 %v3082_v13  ;;  %v2570_v27 = vor.u32 %v3523_v15, %v2567_v16  ;;  %v3740_v55 = vld [vmem:[#allocation5 + $0x7c4] sm:$0xf0]  ;;  %v3410_v61 = vor.u32 %v3732_v49, %v3407_v50 }
  0x28   :  { %v3515_v10 = vld [vmem:[#allocation5 + $0xbc] sm:$0xf0]  ;;  %1745 = vmatpush.bf16.msrb.mxu3 %v2698_v63  ;;  %v3015_v19 = vld [vmem:[#allocation5 + $0x4c0] sm:$0xf0]  ;;  %v1662_v56 = vsel %vm1654_vm0, %v1381_v39, 0  ;;  %v3406_v63 = vor.u32 %v3740_v55, %v3405_v54 }
  0x29   :  { %v3013_v11 = vld [vmem:[#allocation5 + $0x480] sm:$0xf]  ;;  %v2502_v21 = vor.u32 %v3515_v10, %v2501_v8  ;;  %1721 = vmatpush.bf16.msra.mxu1 %v3078_v7  ;;  %v3901_v22 = vld [vmem:[#allocation1 + $0x12] sm:$0xff]  ;;  %v3018_v28 = vor.u32 %v3635_v18, %v3015_v19 }
  0x2a   :  { %v3643_v14 = vld [vmem:[#allocation5 + $0x4bc] sm:$0xf0]  ;;  %v3507_v30 = vld [vmem:[#allocation5 + $0x84] sm:$0xf]  ;;  %3459 = vmatmul.msk.bf16.vlgmr.msra.gmra.mxu3 %vm1651_vm1, %v3901_v22  ;;  %v3588_v57 = vld [vmem:[#allocation5 + $0x30c] sm:$0xf] }
  0x2b   :  { %v3014_v23 = vor.u32 %v3643_v14, %v3013_v11  ;;  %v2437_v24 = vld [vmem:[#allocation5] sm:$0xf]  ;;  %v2503_v32 = vld [vmem:[#allocation5 + $0xc0] sm:$0xf0]  ;;  %1709 = vmatpush.bf16.msra.mxu0 %v2502_v21  ;;  %1761 = vmatpush.bf16.msra.mxu2 %v3018_v28  ;;  %v2831_v58 = vld [vmem:[#allocation5 + $0x348] sm:$0xf0] }
  0x2c   :  { %v3499_v25 = vld [vmem:[#allocation5 + $0x3c] sm:$0xf0]  ;;  %1746 = vmatpush.bf16.msrb.mxu3 %v2634_v12  ;;  %v3619_v33 = vld [vmem:[#allocation5 + $0x404] sm:$0xf]  ;;  %v2506_v42 = vor.u32 %v3507_v30, %v2503_v32  ;;  %v3716_v0 = vld [vmem:[#allocation5 + $0x70c] sm:$0xf]  ;;  %v2834_v3 = vor.u32 %v3588_v57, %v2831_v58  ;;  %v1110_v57 = vunpack.c.h.b16 %v3899_v20 }
  0x2d   :  { %v2949_v9 = vld [vmem:[#allocation5 + $0x400] sm:$0xf]  ;;  %v2951_v34 = vld [vmem:[#allocation5 + $0x440] sm:$0xf0]  ;;  %v2438_v35 = vor.u32 %v3499_v25, %v2437_v24  ;;  %1722 = vmatpush.bf16.msra.mxu1 %v3014_v23  ;;  %v3343_v1 = vld [vmem:[#allocation5 + $0x748] sm:$0xf0] }
  0x2e   :  { %v3627_v29 = vld [vmem:[#allocation5 + $0x43c] sm:$0xf0]  ;;  %v2954_v43 = vor.u32 %v3619_v33, %v2951_v34  ;;  %v3491_v46 = vld [vmem:[#allocation5 + $0x4] sm:$0xf]  ;;  %v2765_v2 = vld [vmem:[#allocation5 + $0x288] sm:$0xf]  ;;  %v3346_v10 = vor.u32 %v3716_v0, %v3343_v1 }
  0x2f   :  { %v2950_v38 = vor.u32 %v3627_v29, %v2949_v9  ;;  %v2439_v47 = vld [vmem:[#allocation5 + $0x40] sm:$0xf0]  ;;  %1710 = vmatpush.bf16.msra.mxu0 %v2438_v35  ;;  %v3580_v4 = vld [vmem:[#allocation5 + $0x2c4] sm:$0xf0]  ;;  %v3572_v7 = vld [vmem:[#allocation5 + $0x28c] sm:$0xf] }
  0x30   :  { %1747 = vmatpush.bf16.msrb.mxu3 %v2570_v27  ;;  %1762 = vmatpush.bf16.msra.mxu2 %v2954_v43  ;;  %v3910_v59 = vld [vmem:[#allocation1 + $0x9] sm:$0xff]  ;;  %v2442_v60 = vor.u32 %v3491_v46, %v2439_v47  ;;  %v3341_v5 = vld [vmem:[#allocation5 + $0x708] sm:$0xf]  ;;  %v2767_v8 = vld [vmem:[#allocation5 + $0x2c8] sm:$0xf0]  ;;  %v2766_v11 = vor.u32 %v3580_v4, %v2765_v2 }
  0x31   :  { %1723 = vmatpush.bf16.msra.mxu1 %v2950_v38  ;;  %v3724_v6 = vld [vmem:[#allocation5 + $0x744] sm:$0xf0]  ;;  %v3700_v13 = vld [vmem:[#allocation5 + $0x68c] sm:$0xf]  ;;  %v2770_v16 = vor.u32 %v3572_v7, %v2767_v8  ;;  %v3921_v20 = vld [vmem:[#allocation5 + $0x810] sm:$0xff] }
  0x32   :  { %1711 = vmatmul.bf16.vlgmr.msra.gmra.mxu0 %v3906_v44  ;;  %v3342_v12 = vor.u32 %v3724_v6, %v3341_v5  ;;  %v3279_v14 = vld [vmem:[#allocation5 + $0x6c8] sm:$0xf0]  ;;  %v2701_v15 = vld [vmem:[#allocation5 + $0x208] sm:$0xf] }
  0x33   :  { %1775 = vmatpush.bf16.msrb.mxu0 %v1659_v45  ;;  %1763 = vmatmul.bf16.vlgmr.msra.gmra.mxu2 %v3910_v59  ;;  %v3277_v18 = vld [vmem:[#allocation5 + $0x688] sm:$0xf]  ;;  %v3556_v21 = vld [vmem:[#allocation5 + $0x20c] sm:$0xf]  ;;  %v3282_v24 = vor.u32 %v3700_v13, %v3279_v14  ;;  %v2702_v25 = vor.u32 %v3564_v17, %v2701_v15 }
  0x34   :  { %1748 = vmatpush.bf16.msrb.mxu3 %v2506_v42  ;;  %1814 = vmatpush.bf16.msrb.mxu2 %v1662_v56  ;;  %v3708_v19 = vld [vmem:[#allocation5 + $0x6c4] sm:$0xf0]  ;;  %v2703_v23 = vld [vmem:[#allocation5 + $0x248] sm:$0xf0] }
  0x35   :  { %1781 = vmatpush.bf16.msrb.mxu1 %v2894_v48  ;;  %v3278_v26 = vor.u32 %v3708_v19, %v3277_v18  ;;  %v3684_v27 = vld [vmem:[#allocation5 + $0x60c] sm:$0xf]  ;;  %v2637_v9 = vld [vmem:[#allocation5 + $0x188] sm:$0xf]  ;;  %v2706_v29 = vor.u32 %v3556_v21, %v2703_v23  ;;  %v3413_v19 = vld [vmem:[#allocation5 + $0x790] sm:$0xf]  ;;  %v1111_v21 = vunpack.c.l.b16 %v3921_v20 }
  0x36   :  { %1724 = vmatmul.bf16.vlgmr.msra.gmra.mxu1 %v3910_v59  ;;  %v3215_v28 = vld [vmem:[#allocation5 + $0x648] sm:$0xf0]  ;;  %v3548_v30 = vld [vmem:[#allocation5 + $0x1c4] sm:$0xf0]  ;;  %v3741_v23 = vld [vmem:[#allocation5 + $0x7cc] sm:$0xf0] }
  0x37   :  { %1820 = vmatpush.bf16.msra.mxu0 %v2898_v52  ;;  %v3213_v31 = vld [vmem:[#allocation5 + $0x608] sm:$0xf]  ;;  %v3218_v33 = vor.u32 %v3684_v27, %v3215_v28  ;;  %v3540_v34 = vld [vmem:[#allocation5 + $0x18c] sm:$0xf]  ;;  %v2638_v36 = vor.u32 %v3548_v30, %v2637_v9  ;;  %v2901_v27 = vld [vmem:[#allocation5 + $0x390] sm:$0xf] }
  0x38   :  { %1749 = vmatpush.bf16.msrb.mxu3 %v2442_v60  ;;  %1833 = vmatpush.bf16.msra.mxu2 %v3410_v61  ;;  %v3692_v32 = vld [vmem:[#allocation5 + $0x644] sm:$0xf0]  ;;  %v2639_v35 = vld [vmem:[#allocation5 + $0x1c8] sm:$0xf0]  ;;  %v3613_v28 = vld [vmem:[#allocation5 + $0x3cc] sm:$0xf0] }
  0x39   :  { %1782 = vmatpush.bf16.msrb.mxu1 %v2830_v62  ;;  %v3214_v37 = vor.u32 %v3692_v32, %v3213_v31  ;;  %v3668_v38 = vld [vmem:[#allocation5 + $0x58c] sm:$0xf]  ;;  %v2573_v40 = vld [vmem:[#allocation5 + $0x108] sm:$0xf]  ;;  %v2642_v45 = vor.u32 %v3540_v34, %v2639_v35  ;;  %v3414_v31 = vor.u32 %v3741_v23, %v3413_v19  ;;  %v1383_v32 = vpack.c.b16 %v1111_v21, %v1111_v21  ;;  %v3349_v35 = vld [vmem:[#allocation5 + $0x710] sm:$0xf] }
  0x3a   :  { %v3151_v39 = vld [vmem:[#allocation5 + $0x5c8] sm:$0xf0]  ;;  %v3532_v41 = vld [vmem:[#allocation5 + $0x144] sm:$0xf0]  ;;  %v2902_v34 = vor.u32 %v3613_v28, %v2901_v27  ;;  %v2583_v19 = vld [vmem:[#allocation5 + $0x150] sm:$0xf0] }
  0x3b   :  { %1821 = vmatpush.bf16.msra.mxu0 %v2834_v3  ;;  %1750 = vmatmul.bf16.vlgmr.msrb.gmra.mxu3 %v3906_v44  ;;  %v3149_v42 = vld [vmem:[#allocation5 + $0x588] sm:$0xf]  ;;  %v3154_v46 = vor.u32 %v3668_v38, %v3151_v39  ;;  %v3524_v47 = vld [vmem:[#allocation5 + $0x10c] sm:$0xf]  ;;  %v2574_v49 = vor.u32 %v3532_v41, %v2573_v40  ;;  %v2839_v38 = vld [vmem:[#allocation5 + $0x350] sm:$0xf0] }
  0x3c   :  { %1794 = vmatpush.bf16.msra.mxu3 %v3406_v63  ;;  %1834 = vmatpush.bf16.msra.mxu2 %v3346_v10  ;;  %v3676_v43 = vld [vmem:[#allocation5 + $0x5c4] sm:$0xf0]  ;;  %v2575_v48 = vld [vmem:[#allocation5 + $0x148] sm:$0xf0]  ;;  %v1382_v10 = vpack.c.b16 %v1110_v57, %v1110_v57  ;;  %v2837_v39 = vld [vmem:[#allocation5 + $0x310] sm:$0xf] }
  0x3d   :  { %1783 = vmatpush.bf16.msrb.mxu1 %v2766_v11  ;;  %v3150_v50 = vor.u32 %v3676_v43, %v3149_v42  ;;  %v3652_v51 = vld [vmem:[#allocation5 + $0x50c] sm:$0xf]  ;;  %v2509_v53 = vld [vmem:[#allocation5 + $0x88] sm:$0xf]  ;;  %v2578_v58 = vor.u32 %v3524_v47, %v2575_v48  ;;  %v3597_v40 = vld [vmem:[#allocation5 + $0x34c] sm:$0xf0] }
  0x3e   :  { %v3087_v52 = vld [vmem:[#allocation5 + $0x548] sm:$0xf0]  ;;  %v3516_v54 = vld [vmem:[#allocation5 + $0xc4] sm:$0xf0]  ;;  %v1665_v9 = vsel %vm1654_vm0, %v1382_v10, 0  ;;  %v1668_v42 = vsel %vm1654_vm0, %v1383_v32, 0 }
  0x3f   :  { %1822 = vmatpush.bf16.msra.mxu0 %v2770_v16  ;;  %v3085_v55 = vld [vmem:[#allocation5 + $0x508] sm:$0xf]  ;;  %v3090_v60 = vor.u32 %v3652_v51, %v3087_v52  ;;  %v3508_v61 = vld [vmem:[#allocation5 + $0x8c] sm:$0xf]  ;;  %v2510_v0 = vor.u32 %v3516_v54, %v2509_v53  ;;  %v3709_v47 = vld [vmem:[#allocation5 + $0x6cc] sm:$0xf0] }
  0x40   :  { %1795 = vmatpush.bf16.msra.mxu3 %v3342_v12  ;;  %1835 = vmatpush.bf16.msra.mxu2 %v3282_v24  ;;  %v3660_v56 = vld [vmem:[#allocation5 + $0x544] sm:$0xf0]  ;;  %v2511_v62 = vld [vmem:[#allocation5 + $0xc8] sm:$0xf0]  ;;  %v3605_v24 = vld [vmem:[#allocation5 + $0x394] sm:$0xf] }
  0x41   :  { %1784 = vmatpush.bf16.msrb.mxu1 %v2702_v25  ;;  %v3636_v63 = vld [vmem:[#allocation5 + $0x48c] sm:$0xf]  ;;  %v3086_v1 = vor.u32 %v3660_v56, %v3085_v55  ;;  %v2445_v3 = vld [vmem:[#allocation5 + $0x8] sm:$0xf]  ;;  %v2514_v7 = vor.u32 %v3508_v61, %v2511_v62  ;;  %v2903_v25 = vld [vmem:[#allocation5 + $0x3d0] sm:$0xf0] }
  0x42   :  { %3460 = vmatmul.msk.bf16.vlgmr.msrb.gmra.mxu0 %vm1651_vm1, %v3901_v22  ;;  %v3023_v2 = vld [vmem:[#allocation5 + $0x4c8] sm:$0xf0]  ;;  %v3500_v4 = vld [vmem:[#allocation5 + $0x44] sm:$0xf0]  ;;  %v3573_v48 = vld [vmem:[#allocation5 + $0x294] sm:$0xf] }
  0x43   :  { %1823 = vmatpush.bf16.msra.mxu0 %v2706_v29  ;;  %3461 = vmatmul.msk.bf16.vlgmr.msrb.gmra.mxu2 %vm1651_vm1, %v3901_v22  ;;  %v3021_v5 = vld [vmem:[#allocation5 + $0x488] sm:$0xf]  ;;  %v3492_v8 = vld [vmem:[#allocation5 + $0xc] sm:$0xf]  ;;  %v3026_v11 = vor.u32 %v3636_v63, %v3023_v2  ;;  %v2446_v15 = vor.u32 %v3500_v4, %v2445_v3  ;;  %v3581_v51 = vld [vmem:[#allocation5 + $0x2cc] sm:$0xf0] }
  0x44   :  { %1796 = vmatpush.bf16.msra.mxu3 %v3278_v26  ;;  %1836 = vmatpush.bf16.msra.mxu2 %v3218_v33  ;;  %v3644_v6 = vld [vmem:[#allocation5 + $0x4c4] sm:$0xf0]  ;;  %v2447_v12 = vld [vmem:[#allocation5 + $0x48] sm:$0xf0]  ;;  %v2906_v33 = vor.u32 %v3605_v24, %v2903_v25  ;;  %v3221_v55 = vld [vmem:[#allocation5 + $0x610] sm:$0xf] }
  0x45   :  { %1785 = vmatpush.bf16.msrb.mxu1 %v2638_v36  ;;  %v3620_v13 = vld [vmem:[#allocation5 + $0x40c] sm:$0xf]  ;;  %v3022_v16 = vor.u32 %v3644_v6, %v3021_v5  ;;  %v2957_v17 = vld [vmem:[#allocation5 + $0x408] sm:$0xf]  ;;  %v2450_v26 = vor.u32 %v3492_v8, %v2447_v12  ;;  %v3725_v36 = vld [vmem:[#allocation5 + $0x74c] sm:$0xf0] }
  0x46   :  { %v2959_v14 = vld [vmem:[#allocation5 + $0x448] sm:$0xf0]  ;;  %v3628_v18 = vld [vmem:[#allocation5 + $0x444] sm:$0xf0]  ;;  %v3350_v41 = vor.u32 %v3725_v36, %v3349_v35  ;;  %v3693_v56 = vld [vmem:[#allocation5 + $0x64c] sm:$0xf0] }
  0x47   :  { %1824 = vmatpush.bf16.msra.mxu0 %v2642_v45  ;;  %v2962_v29 = vor.u32 %v3620_v13, %v2959_v14  ;;  %v2958_v30 = vor.u32 %v3628_v18, %v2957_v17  ;;  %v2838_v45 = vor.u32 %v3597_v40, %v2837_v39  ;;  %v3557_v57 = vld [vmem:[#allocation5 + $0x214] sm:$0xf]  ;;  %v3565_v61 = vld [vmem:[#allocation5 + $0x24c] sm:$0xf0]  ;;  %v3222_v62 = vor.u32 %v3693_v56, %v3221_v55  ;;  %v3932_v28 = vld [vmem:[#allocation5 + $0x818] sm:$0xff] }
  0x48   :  { %1797 = vmatpush.bf16.msra.mxu3 %v3214_v37  ;;  %1837 = vmatpush.bf16.msra.mxu2 %v3154_v46  ;;  %v3589_v37 = vld [vmem:[#allocation5 + $0x314] sm:$0xf]  ;;  %v3285_v46 = vld [vmem:[#allocation5 + $0x690] sm:$0xf]  ;;  %v1113_v36 = vunpack.c.l.b16 %v3932_v28 }
  0x49   :  { %1786 = vmatpush.bf16.msrb.mxu1 %v2574_v49  ;;  %v2842_v43 = vor.u32 %v3589_v37, %v2839_v38  ;;  %v2775_v49 = vld [vmem:[#allocation5 + $0x2d0] sm:$0xf0]  ;;  %v3286_v52 = vor.u32 %v3709_v47, %v3285_v46  ;;  %v3157_v3 = vld [vmem:[#allocation5 + $0x590] sm:$0xf] }
  0x4a   :  { %v2778_v53 = vor.u32 %v3573_v48, %v2775_v49  ;;  %v3733_v63 = vld [vmem:[#allocation5 + $0x794] sm:$0xf]  ;;  %v3677_v4 = vld [vmem:[#allocation5 + $0x5cc] sm:$0xf0] }
  0x4b   :  { %1825 = vmatpush.bf16.msra.mxu0 %v2578_v58  ;;  %v2711_v58 = vld [vmem:[#allocation5 + $0x250] sm:$0xf0]  ;;  %v3549_v8 = vld [vmem:[#allocation5 + $0x1cc] sm:$0xf0] }
  0x4c   :  { %1798 = vmatpush.bf16.msra.mxu3 %v3150_v50  ;;  %1838 = vmatpush.bf16.msra.mxu2 %v3090_v60  ;;  %v2773_v50 = vld [vmem:[#allocation5 + $0x290] sm:$0xf]  ;;  %v3541_v5 = vld [vmem:[#allocation5 + $0x194] sm:$0xf] }
  0x4d   :  { %1787 = vmatpush.bf16.msrb.mxu1 %v2510_v0  ;;  %v2774_v54 = vor.u32 %v3581_v51, %v2773_v50  ;;  %v2709_v60 = vld [vmem:[#allocation5 + $0x210] sm:$0xf]  ;;  %v3415_v0 = vld [vmem:[#allocation5 + $0x7d0] sm:$0xf0]  ;;  %v2909_v51 = vld [vmem:[#allocation5 + $0x398] sm:$0xf] }
  0x4e   :  { %v2710_v2 = vor.u32 %v3565_v61, %v2709_v60  ;;  %v2647_v6 = vld [vmem:[#allocation5 + $0x1d0] sm:$0xf0]  ;;  %v3418_v10 = vor.u32 %v3733_v63, %v3415_v0  ;;  %v3661_v17 = vld [vmem:[#allocation5 + $0x54c] sm:$0xf0]  ;;  %v3734_v61 = vld [vmem:[#allocation5 + $0x79c] sm:$0xf] }
  0x4f   :  { %1826 = vmatpush.bf16.msra.mxu0 %v2514_v7  ;;  %v2645_v7 = vld [vmem:[#allocation5 + $0x190] sm:$0xf]  ;;  %v3717_v12 = vld [vmem:[#allocation5 + $0x714] sm:$0xf]  ;;  %v2650_v14 = vor.u32 %v3541_v5, %v2647_v6  ;;  %v3423_v63 = vld [vmem:[#allocation5 + $0x7d8] sm:$0xf0] }
  0x50   :  { %1799 = vmatpush.bf16.msra.mxu3 %v3086_v1  ;;  %1839 = vmatpush.bf16.msra.mxu2 %v3026_v11  ;;  %v2714_v1 = vor.u32 %v3557_v57, %v2711_v58  ;;  %v3158_v11 = vor.u32 %v3677_v4, %v3157_v3  ;;  %v3351_v13 = vld [vmem:[#allocation5 + $0x750] sm:$0xf0]  ;;  %v2581_v21 = vld [vmem:[#allocation5 + $0x110] sm:$0xf]  ;;  %v2845_v0 = vld [vmem:[#allocation5 + $0x318] sm:$0xf] }
  0x51   :  { %1788 = vmatpush.bf16.msrb.mxu1 %v2446_v15  ;;  %v2646_v15 = vor.u32 %v3549_v8, %v2645_v7  ;;  %v3525_v18 = vld [vmem:[#allocation5 + $0x114] sm:$0xf]  ;;  %v3533_v23 = vld [vmem:[#allocation5 + $0x14c] sm:$0xf0]  ;;  %v3354_v24 = vor.u32 %v3717_v12, %v3351_v13  ;;  %v3421_v3 = vld [vmem:[#allocation5 + $0x798] sm:$0xf]  ;;  %v3426_v7 = vor.u32 %v3734_v61, %v3423_v63 }
  0x52   :  { %v3287_v27 = vld [vmem:[#allocation5 + $0x6d0] sm:$0xf0]  ;;  %v3517_v35 = vld [vmem:[#allocation5 + $0xcc] sm:$0xf0]  ;;  %v3742_v4 = vld [vmem:[#allocation5 + $0x7d4] sm:$0xf0] }
  0x53   :  { %1827 = vmatpush.bf16.msra.mxu0 %v2450_v26  ;;  %v3701_v26 = vld [vmem:[#allocation5 + $0x694] sm:$0xf]  ;;  %v3629_v46 = vld [vmem:[#allocation5 + $0x44c] sm:$0xf0]  ;;  %v3422_v12 = vor.u32 %v3742_v4, %v3421_v3  ;;  %v3718_v13 = vld [vmem:[#allocation5 + $0x71c] sm:$0xf] }
  0x54   :  { %1800 = vmatpush.bf16.msra.mxu3 %v3022_v16  ;;  %1789 = vmatmul.bf16.vlgmr.msrb.gmra.mxu1 %v3906_v44  ;;  %v3093_v16 = vld [vmem:[#allocation5 + $0x510] sm:$0xf]  ;;  %v3509_v32 = vld [vmem:[#allocation5 + $0x94] sm:$0xf]  ;;  %v3290_v37 = vor.u32 %v3701_v26, %v3287_v27  ;;  %v3702_v27 = vld [vmem:[#allocation5 + $0x69c] sm:$0xf] }
  0x55   :  { %1853 = vmatpush.bf16.msra.mxu1 %v1665_v9  ;;  %1840 = vmatpush.bf16.msra.mxu2 %v2962_v29  ;;  %v3094_v25 = vor.u32 %v3661_v17, %v3093_v16  ;;  %v2586_v9 = vor.u32 %v3525_v18, %v2583_v19  ;;  %v2582_v29 = vor.u32 %v3533_v23, %v2581_v21  ;;  %v3685_v39 = vld [vmem:[#allocation5 + $0x614] sm:$0xf]  ;;  %v2453_v49 = vld [vmem:[#allocation5 + $0x10] sm:$0xf]  ;;  %v3582_v16 = vld [vmem:[#allocation5 + $0x2d4] sm:$0xf0] }
  0x56   :  { %1828 = vmatmul.bf16.vlgmr.msra.gmra.mxu0 %v3906_v44  ;;  %v3223_v40 = vld [vmem:[#allocation5 + $0x650] sm:$0xf0]  ;;  %v3501_v50 = vld [vmem:[#allocation5 + $0x4c] sm:$0xf0]  ;;  %v3357_v17 = vld [vmem:[#allocation5 + $0x718] sm:$0xf] }
  0x57   :  { %1872 = vmatpush.bf16.msrb.mxu0 %v3414_v31  ;;  %v3645_v31 = vld [vmem:[#allocation5 + $0x4cc] sm:$0xf0]  ;;  %v3493_v47 = vld [vmem:[#allocation5 + $0x14] sm:$0xf]  ;;  %v2454_v57 = vor.u32 %v3501_v50, %v2453_v49  ;;  %v3726_v18 = vld [vmem:[#allocation5 + $0x754] sm:$0xf0] }
  0x58   :  { %1801 = vmatpush.bf16.msra.mxu3 %v2958_v30  ;;  %1841 = vmatmul.bf16.vlgmr.msra.gmra.mxu2 %v3910_v59  ;;  %v3029_v30 = vld [vmem:[#allocation5 + $0x490] sm:$0xf]  ;;  %v2455_v48 = vld [vmem:[#allocation5 + $0x50] sm:$0xf0]  ;;  %v3358_v26 = vor.u32 %v3726_v18, %v3357_v17  ;;  %v3103_v4 = vld [vmem:[#allocation5 + $0x558] sm:$0xf0] }
  0x59   :  { %1898 = vmatpush.bf16.msrb.mxu2 %v2906_v33  ;;  %1892 = vmatpush.bf16.msrb.mxu1 %v1668_v42  ;;  %v2519_v33 = vld [vmem:[#allocation5 + $0xd0] sm:$0xf0]  ;;  %v3030_v38 = vor.u32 %v3645_v31, %v3029_v30  ;;  %v3566_v30 = vld [vmem:[#allocation5 + $0x254] sm:$0xf0]  ;;  %v3039_v18 = vld [vmem:[#allocation5 + $0x4d8] sm:$0xf0] }
  0x5a   :  { %v2522_v42 = vor.u32 %v3509_v32, %v2519_v33  ;;  %v3669_v58 = vld [vmem:[#allocation5 + $0x594] sm:$0xf]  ;;  %v3293_v31 = vld [vmem:[#allocation5 + $0x698] sm:$0xf] }
  0x5b   :  { %1802 = vmatmul.bf16.vlgmr.msra.gmra.mxu3 %v3910_v59  ;;  %1873 = vmatpush.bf16.msrb.mxu0 %v3350_v41  ;;  %v1112_v41 = vunpack.c.h.b16 %v3921_v20  ;;  %v2458_v20 = vor.u32 %v3493_v47, %v2455_v48  ;;  %v3159_v60 = vld [vmem:[#allocation5 + $0x5d0] sm:$0xf0]  ;;  %v3710_v32 = vld [vmem:[#allocation5 + $0x6d4] sm:$0xf0] }
  0x5c   :  { %1859 = vmatpush.bf16.msrb.mxu3 %v2902_v34  ;;  %v2517_v34 = vld [vmem:[#allocation5 + $0x90] sm:$0xf]  ;;  %v3162_v5 = vor.u32 %v3669_v58, %v3159_v60  ;;  %v3653_v8 = vld [vmem:[#allocation5 + $0x514] sm:$0xf]  ;;  %v3694_v47 = vld [vmem:[#allocation5 + $0x654] sm:$0xf0] }
  0x5d   :  { %1899 = vmatpush.bf16.msrb.mxu2 %v2842_v43  ;;  %v2518_v43 = vor.u32 %v3517_v35, %v2517_v34  ;;  %v1384_v56 = vpack.c.b16 %v1112_v41, %v1112_v41  ;;  %v3637_v23 = vld [vmem:[#allocation5 + $0x494] sm:$0xf]  ;;  %v3686_v41 = vld [vmem:[#allocation5 + $0x61c] sm:$0xf]  ;;  %v3165_v58 = vld [vmem:[#allocation5 + $0x598] sm:$0xf] }
  0x5e   :  { %v3621_v34 = vld [vmem:[#allocation5 + $0x414] sm:$0xf]  ;;  %v3678_v60 = vld [vmem:[#allocation5 + $0x5d4] sm:$0xf0] }
  0x5f   :  { %1874 = vmatpush.bf16.msrb.mxu0 %v3286_v52  ;;  %v3614_v52 = vld [vmem:[#allocation5 + $0x3d4] sm:$0xf0]  ;;  %v1671_v6 = vsel %vm1654_vm0, %v1384_v56, 0  ;;  %v3167_v56 = vld [vmem:[#allocation5 + $0x5d8] sm:$0xf0]  ;;  %v3166_v3 = vor.u32 %v3678_v60, %v3165_v58 }
  0x60   :  { %1860 = vmatpush.bf16.msrb.mxu3 %v2838_v45  ;;  %v2965_v45 = vld [vmem:[#allocation5 + $0x410] sm:$0xf]  ;;  %v3510_v58 = vld [vmem:[#allocation5 + $0x9c] sm:$0xf] }
  0x61   :  { %1900 = vmatpush.bf16.msrb.mxu2 %v2778_v53  ;;  %v1385_v53 = vpack.c.b16 %v1113_v36, %v1113_v36  ;;  %v2966_v55 = vor.u32 %v3629_v46, %v2965_v45  ;;  %v2967_v36 = vld [vmem:[#allocation5 + $0x450] sm:$0xf0]  ;;  %v3550_v45 = vld [vmem:[#allocation5 + $0x1d4] sm:$0xf0]  ;;  %v2527_v60 = vld [vmem:[#allocation5 + $0xd8] sm:$0xf0] }
  0x62   :  { %v3229_v46 = vld [vmem:[#allocation5 + $0x618] sm:$0xf]  ;;  %v2970_v48 = vor.u32 %v3621_v34, %v2967_v36  ;;  %v3429_v34 = vld [vmem:[#allocation5 + $0x7a0] sm:$0xf] }
  0x63   :  { %1875 = vmatpush.bf16.msrb.mxu0 %v3222_v62  ;;  %v2910_v62 = vor.u32 %v3614_v52, %v2909_v51  ;;  %v3230_v52 = vor.u32 %v3694_v47, %v3229_v46  ;;  %v2591_v46 = vld [vmem:[#allocation5 + $0x158] sm:$0xf0] }
  0x64   :  { %1861 = vmatpush.bf16.msrb.mxu3 %v2774_v54  ;;  %3462 = vmatmul.msk.bf16.vlgmr.msra.gmra.mxu1 %vm1651_vm1, %v3901_v22  ;;  %v3226_v54 = vor.u32 %v3685_v39, %v3223_v40  ;;  %v3294_v40 = vor.u32 %v3710_v32, %v3293_v31  ;;  %v2973_v31 = vld [vmem:[#allocation5 + $0x418] sm:$0xf] }
  0x65   :  { %1901 = vmatpush.bf16.msrb.mxu2 %v2714_v1  ;;  %1911 = vmatpush.bf16.msra.mxu1 %v3418_v10  ;;  %v3598_v1 = vld [vmem:[#allocation5 + $0x354] sm:$0xf0]  ;;  %v3095_v10 = vld [vmem:[#allocation5 + $0x550] sm:$0xf0] }
  0x66   :  { %v3098_v19 = vor.u32 %v3653_v8, %v3095_v10  ;;  %v3662_v8 = vld [vmem:[#allocation5 + $0x554] sm:$0xf0]  ;;  %v1114_v10 = vunpack.c.h.b16 %v3932_v28 }
  0x67   :  { %1876 = vmatpush.bf16.msrb.mxu0 %v3158_v11  ;;  %v2846_v11 = vor.u32 %v3598_v1, %v2845_v0  ;;  %v3574_v0 = vld [vmem:[#allocation5 + $0x29c] sm:$0xf] }
  0x68   :  { %1862 = vmatpush.bf16.msrb.mxu3 %v2710_v2  ;;  %v1674_v2 = vsel %vm1654_vm0, %v1385_v53, 0  ;;  %v3590_v53 = vld [vmem:[#allocation5 + $0x31c] sm:$0xf]  ;;  %v1386_v28 = vpack.c.b16 %v1114_v10, %v1114_v10 }
  0x69   :  { %1902 = vmatpush.bf16.msrb.mxu2 %v2650_v14  ;;  %1912 = vmatpush.bf16.msra.mxu1 %v3354_v24  ;;  %v3359_v14 = vld [vmem:[#allocation5 + $0x758] sm:$0xf0]  ;;  %v3031_v24 = vld [vmem:[#allocation5 + $0x4d0] sm:$0xf0] }
  0x6a   :  { %v3362_v21 = vor.u32 %v3718_v13, %v3359_v14  ;;  %v3034_v33 = vor.u32 %v3637_v23, %v3031_v24  ;;  %v2783_v1 = vld [vmem:[#allocation5 + $0x2d8] sm:$0xf0]  ;;  %v3037_v23 = vld [vmem:[#allocation5 + $0x498] sm:$0xf]  ;;  %v1677_v36 = vsel %vm1654_vm0, %v1386_v28, 0 }
  0x6b   :  { %1877 = vmatpush.bf16.msrb.mxu0 %v3094_v25  ;;  %v3558_v14 = vld [vmem:[#allocation5 + $0x21c] sm:$0xf]  ;;  %v3646_v24 = vld [vmem:[#allocation5 + $0x4d4] sm:$0xf0] }
  0x6c   :  { %1863 = vmatpush.bf16.msrb.mxu3 %v2646_v15  ;;  %v2781_v15 = vld [vmem:[#allocation5 + $0x298] sm:$0xf]  ;;  %v3038_v32 = vor.u32 %v3646_v24, %v3037_v23  ;;  %v2463_v10 = vld [vmem:[#allocation5 + $0x58] sm:$0xf0]  ;;  %v3431_v24 = vld [vmem:[#allocation5 + $0x7e0] sm:$0xf0] }
  0x6d   :  { %1903 = vmatpush.bf16.msrb.mxu2 %v2586_v9  ;;  %1913 = vmatpush.bf16.msra.mxu1 %v3290_v37  ;;  %v2782_v25 = vor.u32 %v3582_v16, %v2781_v15  ;;  %v3295_v9 = vld [vmem:[#allocation5 + $0x6d8] sm:$0xf0] }
  0x6e   :  { %v3298_v35 = vor.u32 %v3702_v27, %v3295_v9  ;;  %v3606_v37 = vld [vmem:[#allocation5 + $0x39c] sm:$0xf] }
  0x6f   :  { %1878 = vmatpush.bf16.msrb.mxu0 %v3030_v38  ;;  %v2911_v38 = vld [vmem:[#allocation5 + $0x3d8] sm:$0xf0] }
  0x70   :  { %1864 = vmatpush.bf16.msrb.mxu3 %v2582_v29  ;;  %v2717_v29 = vld [vmem:[#allocation5 + $0x218] sm:$0xf]  ;;  %v2914_v49 = vor.u32 %v3606_v37, %v2911_v38  ;;  %v2719_v15 = vld [vmem:[#allocation5 + $0x258] sm:$0xf0]  ;;  %v3607_v37 = vld [vmem:[#allocation5 + $0x3a4] sm:$0xf] }
  0x71   :  { %1904 = vmatpush.bf16.msrb.mxu2 %v2522_v42  ;;  %1914 = vmatpush.bf16.msra.mxu1 %v3226_v54  ;;  %v2718_v39 = vor.u32 %v3566_v30, %v2717_v29  ;;  %v3231_v42 = vld [vmem:[#allocation5 + $0x658] sm:$0xf0]  ;;  %v2919_v38 = vld [vmem:[#allocation5 + $0x3e0] sm:$0xf0] }
  0x72   :  { %v3234_v50 = vor.u32 %v3686_v41, %v3231_v42  ;;  %v2847_v54 = vld [vmem:[#allocation5 + $0x358] sm:$0xf0]  ;;  %v3615_v41 = vld [vmem:[#allocation5 + $0x3dc] sm:$0xf0] }
  0x73   :  { %1879 = vmatpush.bf16.msrb.mxu0 %v2966_v55  ;;  %v3670_v55 = vld [vmem:[#allocation5 + $0x59c] sm:$0xf]  ;;  %v2850_v61 = vor.u32 %v3590_v53, %v2847_v54  ;;  %v2855_v53 = vld [vmem:[#allocation5 + $0x360] sm:$0xf0] }
  0x74   :  { %1865 = vmatpush.bf16.msrb.mxu3 %v2518_v43  ;;  %3463 = vmatmul.msk.bf16.vlgmr.msrb.gmra.mxu1 %vm1651_vm1, %v3901_v22  ;;  %v2653_v43 = vld [vmem:[#allocation5 + $0x198] sm:$0xf]  ;;  %v3638_v16 = vld [vmem:[#allocation5 + $0x49c] sm:$0xf]  ;;  %v3950_v54 = vld [vmem:[#allocation5 + $0x820] sm:$0xff] }
  0x75   :  { %1905 = vmatpush.bf16.msrb.mxu2 %v2458_v20  ;;  %1915 = vmatpush.bf16.msra.mxu1 %v3162_v5  ;;  %v2654_v51 = vor.u32 %v3550_v45, %v2653_v43  ;;  %v2589_v20 = vld [vmem:[#allocation5 + $0x118] sm:$0xf]  ;;  %v3042_v27 = vor.u32 %v3638_v16, %v3039_v18  ;;  %v3622_v29 = vld [vmem:[#allocation5 + $0x41c] sm:$0xf]  ;;  %v3559_v16 = vld [vmem:[#allocation5 + $0x224] sm:$0xf] }
  0x76   :  { %1880 = vmatmul.bf16.vlgmr.msrb.gmra.mxu0 %v3910_v59  ;;  %v2525_v5 = vld [vmem:[#allocation5 + $0x98] sm:$0xf]  ;;  %v2975_v30 = vld [vmem:[#allocation5 + $0x458] sm:$0xf0] }
  0x77   :  { %1937 = vmatpush.bf16.msra.mxu0 %v2910_v62  ;;  %v3170_v62 = vor.u32 %v3670_v55, %v3167_v56  ;;  %v2978_v42 = vor.u32 %v3622_v29, %v2975_v30  ;;  %v3526_v45 = vld [vmem:[#allocation5 + $0x11c] sm:$0xf]  ;;  %v2853_v56 = vld [vmem:[#allocation5 + $0x320] sm:$0xf]  ;;  %v2663_v29 = vld [vmem:[#allocation5 + $0x1e0] sm:$0xf0] }
  0x78   :  { %1866 = vmatpush.bf16.msrb.mxu3 %v2454_v57  ;;  %1906 = vmatmul.bf16.vlgmr.msrb.gmra.mxu2 %v3906_v44  ;;  %v3534_v57 = vld [vmem:[#allocation5 + $0x154] sm:$0xf0]  ;;  %v2594_v55 = vor.u32 %v3526_v45, %v2591_v46  ;;  %v2597_v45 = vld [vmem:[#allocation5 + $0x120] sm:$0xf] }
  0x79   :  { %1970 = vmatpush.bf16.msra.mxu2 %v1674_v2  ;;  %1916 = vmatpush.bf16.msra.mxu1 %v3098_v19  ;;  %v2590_v63 = vor.u32 %v3534_v57, %v2589_v20  ;;  %v3654_v2 = vld [vmem:[#allocation5 + $0x51c] sm:$0xf]  ;;  %v2461_v19 = vld [vmem:[#allocation5 + $0x18] sm:$0xf]  ;;  %v3599_v20 = vld [vmem:[#allocation5 + $0x35c] sm:$0xf0] }
  0x7a   :  { %v3535_v46 = vld [vmem:[#allocation5 + $0x15c] sm:$0xf0] }
  0x7b   :  { %1867 = vmatmul.bf16.vlgmr.msrb.gmra.mxu3 %v3906_v44  ;;  %1938 = vmatpush.bf16.msra.mxu0 %v2846_v11  ;;  %v2786_v11 = vor.u32 %v3574_v0, %v2783_v1  ;;  %v1115_v0 = vunpack.c.l.b16 %v3950_v54  ;;  %v2854_v1 = vor.u32 %v3599_v20, %v2853_v56  ;;  %v2535_v56 = vld [vmem:[#allocation5 + $0xe0] sm:$0xf0] }
  0x7c   :  { %1931 = vmatpush.bf16.msra.mxu3 %v1671_v6  ;;  %v3518_v6 = vld [vmem:[#allocation5 + $0xd4] sm:$0xf0] }
  0x7d   :  { %1989 = vmatpush.bf16.msrb.mxu2 %v3426_v7  ;;  %1917 = vmatpush.bf16.msra.mxu1 %v3034_v33  ;;  %v3101_v7 = vld [vmem:[#allocation5 + $0x518] sm:$0xf]  ;;  %v2526_v13 = vor.u32 %v3518_v6, %v2525_v5  ;;  %v2789_v5 = vld [vmem:[#allocation5 + $0x2a0] sm:$0xf] }
  0x7e   :  { %v3102_v17 = vor.u32 %v3662_v8, %v3101_v7  ;;  %v3630_v33 = vld [vmem:[#allocation5 + $0x454] sm:$0xf0]  ;;  %v3583_v6 = vld [vmem:[#allocation5 + $0x2dc] sm:$0xf0]  ;;  %v3494_v8 = vld [vmem:[#allocation5 + $0x1c] sm:$0xf] }
  0x7f   :  { %1939 = vmatpush.bf16.msra.mxu0 %v2782_v25  ;;  %v2722_v25 = vor.u32 %v3558_v14, %v2719_v15  ;;  %v2974_v47 = vor.u32 %v3630_v33, %v2973_v31  ;;  %v1387_v14 = vpack.c.b16 %v1115_v0, %v1115_v0  ;;  %v2790_v15 = vor.u32 %v3583_v6, %v2789_v5  ;;  %v2661_v31 = vld [vmem:[#allocation5 + $0x1a0] sm:$0xf]  ;;  %v2471_v6 = vld [vmem:[#allocation5 + $0x60] sm:$0xf0] }
  0x80   :  { %1950 = vmatpush.bf16.msrb.mxu3 %v3422_v12  ;;  %v3106_v12 = vor.u32 %v3654_v2, %v3103_v4  ;;  %v3575_v2 = vld [vmem:[#allocation5 + $0x2a4] sm:$0xf]  ;;  %v2530_v4 = vor.u32 %v3510_v58, %v2527_v60  ;;  %v2466_v18 = vor.u32 %v3494_v8, %v2463_v10  ;;  %v3519_v58 = vld [vmem:[#allocation5 + $0xdc] sm:$0xf0]  ;;  %v3616_v8 = vld [vmem:[#allocation5 + $0x3e4] sm:$0xf0] }
  0x81   :  { %1990 = vmatpush.bf16.msrb.mxu2 %v3362_v21  ;;  %1918 = vmatpush.bf16.msra.mxu1 %v2970_v48  ;;  %v3502_v21 = vld [vmem:[#allocation5 + $0x54] sm:$0xf0]  ;;  %v2922_v48 = vor.u32 %v3607_v37, %v2919_v38  ;;  %v3109_v37 = vld [vmem:[#allocation5 + $0x520] sm:$0xf] }
  0x82   :  { %v2462_v9 = vor.u32 %v3502_v21, %v2461_v19  ;;  %v2725_v19 = vld [vmem:[#allocation5 + $0x220] sm:$0xf] }
  0x83   :  { %1940 = vmatpush.bf16.msra.mxu0 %v2718_v39  ;;  %v3567_v21 = vld [vmem:[#allocation5 + $0x25c] sm:$0xf0] }
  0x84   :  { %1951 = vmatpush.bf16.msrb.mxu3 %v3358_v26  ;;  %1919 = vmatmul.bf16.vlgmr.msra.gmra.mxu1 %v3910_v59  ;;  %v2655_v26 = vld [vmem:[#allocation5 + $0x1d8] sm:$0xf0]  ;;  %v3663_v38 = vld [vmem:[#allocation5 + $0x55c] sm:$0xf0] }
  0x85   :  { %1991 = vmatpush.bf16.msrb.mxu2 %v3298_v35  ;;  %1976 = vmatpush.bf16.msrb.mxu1 %v2914_v49  ;;  %v3743_v35 = vld [vmem:[#allocation5 + $0x7dc] sm:$0xf0] }
  0x86   :  { %v3430_v43 = vor.u32 %v3743_v35, %v3429_v34  ;;  %v3365_v49 = vld [vmem:[#allocation5 + $0x720] sm:$0xf]  ;;  %v3719_v34 = vld [vmem:[#allocation5 + $0x724] sm:$0xf] }
  0x87   :  { %1941 = vmatpush.bf16.msra.mxu0 %v2654_v51  ;;  %v3367_v35 = vld [vmem:[#allocation5 + $0x760] sm:$0xf0] }
  0x88   :  { %1952 = vmatpush.bf16.msrb.mxu3 %v3294_v40  ;;  %3465 = vmatmul.msk.bf16.vlgmr.msra.gmra.mxu2 %vm1651_vm1, %v3901_v22  ;;  %v2917_v40 = vld [vmem:[#allocation5 + $0x3a0] sm:$0xf] }
  0x89   :  { %1992 = vmatpush.bf16.msrb.mxu2 %v3234_v50  ;;  %1977 = vmatpush.bf16.msrb.mxu1 %v2850_v61  ;;  %v3727_v50 = vld [vmem:[#allocation5 + $0x75c] sm:$0xf0]  ;;  %v2918_v51 = vor.u32 %v3615_v41, %v2917_v40  ;;  %v3527_v40 = vld [vmem:[#allocation5 + $0x124] sm:$0xf] }
  0x8a   :  { %v3366_v57 = vor.u32 %v3727_v50, %v3365_v49  ;;  %v2599_v41 = vld [vmem:[#allocation5 + $0x160] sm:$0xf0] }
  0x8b   :  { %3464 = vmatmul.msk.bf16.vlgmr.msra.gmra.mxu3 %vm1651_vm1, %v3901_v22  ;;  %1942 = vmatpush.bf16.msra.mxu0 %v2590_v63  ;;  %v3542_v22 = vld [vmem:[#allocation5 + $0x19c] sm:$0xf]  ;;  %v3711_v63 = vld [vmem:[#allocation5 + $0x6dc] sm:$0xf0]  ;;  %v3303_v49 = vld [vmem:[#allocation5 + $0x6e0] sm:$0xf0]  ;;  %v2602_v50 = vor.u32 %v3527_v40, %v2599_v41 }
  0x8c   :  { %1953 = vmatpush.bf16.msrb.mxu3 %v3230_v52  ;;  %v2658_v39 = vor.u32 %v3542_v22, %v2655_v26  ;;  %v3591_v52 = vld [vmem:[#allocation5 + $0x324] sm:$0xf]  ;;  %v3173_v22 = vld [vmem:[#allocation5 + $0x5a0] sm:$0xf]  ;;  %v3373_v40 = vld [vmem:[#allocation5 + $0x728] sm:$0xf] }
  0x8d   :  { %1993 = vmatpush.bf16.msrb.mxu2 %v3170_v62  ;;  %1978 = vmatpush.bf16.msrb.mxu1 %v2786_v11  ;;  %v2858_v61 = vor.u32 %v3591_v52, %v2855_v53  ;;  %v3301_v62 = vld [vmem:[#allocation5 + $0x6a0] sm:$0xf]  ;;  %v3962_v52 = vld [vmem:[#allocation5 + $0x828] sm:$0xff]  ;;  %v2598_v53 = vor.u32 %v3535_v46, %v2597_v45  ;;  %v3639_v45 = vld [vmem:[#allocation5 + $0x4a4] sm:$0xf] }
  0x8e   :  { %v3302_v7 = vor.u32 %v3711_v63, %v3301_v62  ;;  %v3679_v26 = vld [vmem:[#allocation5 + $0x5dc] sm:$0xf0]  ;;  %v3239_v62 = vld [vmem:[#allocation5 + $0x660] sm:$0xf0]  ;;  %v1117_v63 = vunpack.c.l.b16 %v3962_v52  ;;  %v3728_v41 = vld [vmem:[#allocation5 + $0x764] sm:$0xf0] }
  0x8f   :  { %1943 = vmatpush.bf16.msra.mxu0 %v2526_v13  ;;  %v3695_v13 = vld [vmem:[#allocation5 + $0x65c] sm:$0xf0]  ;;  %v3174_v33 = vor.u32 %v3679_v26, %v3173_v22  ;;  %v3744_v22 = vld [vmem:[#allocation5 + $0x7e4] sm:$0xf0]  ;;  %v3047_v46 = vld [vmem:[#allocation5 + $0x4e0] sm:$0xf0] }
  0x90   :  { %1954 = vmatpush.bf16.msrb.mxu3 %v3166_v3  ;;  %v2791_v3 = vld [vmem:[#allocation5 + $0x2e0] sm:$0xf0] }
  0x91   :  { %1994 = vmatpush.bf16.msrb.mxu2 %v3106_v12  ;;  %1979 = vmatpush.bf16.msrb.mxu1 %v2722_v25  ;;  %v2794_v11 = vor.u32 %v3575_v2, %v2791_v3  ;;  %v3237_v12 = vld [vmem:[#allocation5 + $0x620] sm:$0xf]  ;;  %v1680_v25 = vsel %vm1654_vm0, %v1387_v14, 0  ;;  %v3495_v3 = vld [vmem:[#allocation5 + $0x24] sm:$0xf] }
  0x92   :  { %v3238_v23 = vor.u32 %v3695_v13, %v3237_v12  ;;  %v3631_v2 = vld [vmem:[#allocation5 + $0x45c] sm:$0xf0]  ;;  %v3671_v14 = vld [vmem:[#allocation5 + $0x5a4] sm:$0xf] }
  0x93   :  { %1944 = vmatpush.bf16.msra.mxu0 %v2462_v9  ;;  %v3543_v9 = vld [vmem:[#allocation5 + $0x1a4] sm:$0xf]  ;;  %v3503_v12 = vld [vmem:[#allocation5 + $0x5c] sm:$0xf0] }
  0x94   :  { %1955 = vmatpush.bf16.msrb.mxu3 %v3102_v17  ;;  %v2727_v17 = vld [vmem:[#allocation5 + $0x260] sm:$0xf0] }
  0x95   :  { %1995 = vmatpush.bf16.msrb.mxu2 %v3042_v27  ;;  %1980 = vmatpush.bf16.msrb.mxu1 %v2658_v39  ;;  %v2730_v28 = vor.u32 %v3559_v16, %v2727_v17  ;;  %v2726_v27 = vor.u32 %v3567_v21, %v2725_v19  ;;  %v1389_v16 = vpack.c.b16 %v1117_v63, %v1117_v63  ;;  %v3736_v21 = vld [vmem:[#allocation5 + $0x7ac] sm:$0xf] }
  0x96   :  { %1945 = vmatmul.bf16.vlgmr.msra.gmra.mxu0 %v3906_v44  ;;  %v2474_v17 = vor.u32 %v3495_v3, %v2471_v6  ;;  %v2669_v6 = vld [vmem:[#allocation5 + $0x1a8] sm:$0xf] }
  0x97   :  { %2009 = vmatpush.bf16.msrb.mxu0 %v1677_v36  ;;  %v2666_v36 = vor.u32 %v3543_v9, %v2663_v29  ;;  %v1686_v26 = vsel %vm1654_vm0, %v1389_v16, 0  ;;  %v3111_v9 = vld [vmem:[#allocation5 + $0x560] sm:$0xf0] }
  0x98   :  { %1956 = vmatpush.bf16.msrb.mxu3 %v3038_v32  ;;  %v3551_v32 = vld [vmem:[#allocation5 + $0x1dc] sm:$0xf0] }
  0x99   :  { %1996 = vmatpush.bf16.msrb.mxu2 %v2978_v42  ;;  %1981 = vmatpush.bf16.msrb.mxu1 %v2594_v55  ;;  %v2662_v39 = vor.u32 %v3551_v32, %v2661_v31  ;;  %v3958_v42 = vld [vmem:[#allocation1 + $0x12] sm:$0xff] }
  0x9a   :  { %v3511_v55 = vld [vmem:[#allocation5 + $0xa4] sm:$0xf] }
  0x9b   :  { %2028 = vmatpush.bf16.msra.mxu0 %v3430_v43  ;;  %v3370_v43 = vor.u32 %v3719_v34, %v3367_v35  ;;  %v2538_v0 = vor.u32 %v3511_v55, %v2535_v56  ;;  %v3720_v34 = vld [vmem:[#allocation5 + $0x72c] sm:$0xf]  ;;  %v3980_v55 = vld [vmem:[#allocation1 + $0x9] sm:$0xff]  ;;  %v3050_v56 = vor.u32 %v3639_v45, %v3047_v46 }
  0x9c   :  { %1957 = vmatpush.bf16.msrb.mxu3 %v2974_v47  ;;  %1997 = vmatmul.bf16.vlgmr.msrb.gmra.mxu2 %v3910_v59  ;;  %v3110_v47 = vor.u32 %v3663_v38, %v3109_v37  ;;  %v3375_v35 = vld [vmem:[#allocation5 + $0x768] sm:$0xf0] }
  0x9d   :  { %2054 = vmatpush.bf16.msra.mxu2 %v2922_v48  ;;  %1982 = vmatpush.bf16.msrb.mxu1 %v2530_v4  ;;  %v3703_v48 = vld [vmem:[#allocation5 + $0x6a4] sm:$0xf]  ;;  %v1116_v4 = vunpack.c.h.b16 %v3950_v54 }
  0x9e   :  { %v3306_v20 = vor.u32 %v3703_v48, %v3303_v49  ;;  %v3378_v48 = vor.u32 %v3720_v34, %v3375_v35  ;;  %v3119_v34 = vld [vmem:[#allocation5 + $0x568] sm:$0xf0]  ;;  %v2541_v35 = vld [vmem:[#allocation5 + $0xa8] sm:$0xf] }
  0x9f   :  { %1958 = vmatmul.bf16.vlgmr.msrb.gmra.mxu3 %v3910_v59  ;;  %2029 = vmatpush.bf16.msra.mxu0 %v3366_v57  ;;  %v3735_v59 = vld [vmem:[#allocation5 + $0x7a4] sm:$0xf]  ;;  %v2533_v57 = vld [vmem:[#allocation5 + $0xa0] sm:$0xf]  ;;  %v1388_v19 = vpack.c.b16 %v1116_v4, %v1116_v4  ;;  %v3688_v4 = vld [vmem:[#allocation5 + $0x62c] sm:$0xf] }
  0xa0   :  { %2015 = vmatpush.bf16.msra.mxu3 %v2918_v51  ;;  %v3434_v30 = vor.u32 %v3735_v59, %v3431_v24  ;;  %v3045_v51 = vld [vmem:[#allocation5 + $0x4a0] sm:$0xf]  ;;  %v2534_v5 = vor.u32 %v3519_v58, %v2533_v57  ;;  %v2861_v59 = vld [vmem:[#allocation5 + $0x328] sm:$0xf] }
  0xa1   :  { %2055 = vmatpush.bf16.msra.mxu2 %v2858_v61  ;;  %1983 = vmatpush.bf16.msrb.mxu1 %v2466_v18  ;;  %v3687_v61 = vld [vmem:[#allocation5 + $0x624] sm:$0xf]  ;;  %v3309_v57 = vld [vmem:[#allocation5 + $0x6a8] sm:$0xf] }
  0xa2   :  { %v3242_v10 = vor.u32 %v3687_v61, %v3239_v62  ;;  %v3712_v58 = vld [vmem:[#allocation5 + $0x6e4] sm:$0xf0]  ;;  %v2983_v61 = vld [vmem:[#allocation5 + $0x460] sm:$0xf0] }
  0xa3   :  { %2030 = vmatpush.bf16.msra.mxu0 %v3302_v7  ;;  %v2925_v7 = vld [vmem:[#allocation5 + $0x3a8] sm:$0xf]  ;;  %v3310_v3 = vor.u32 %v3712_v58, %v3309_v57 }
  0xa4   :  { %2016 = vmatpush.bf16.msra.mxu3 %v2854_v1  ;;  %1984 = vmatmul.bf16.vlgmr.msrb.gmra.mxu1 %v3906_v44  ;;  %v3647_v44 = vld [vmem:[#allocation5 + $0x4dc] sm:$0xf0]  ;;  %v2926_v18 = vor.u32 %v3616_v8, %v2925_v7  ;;  %v3504_v57 = vld [vmem:[#allocation5 + $0x64] sm:$0xf0] }
  0xa5   :  { %2056 = vmatpush.bf16.msra.mxu2 %v2794_v11  ;;  %2048 = vmatpush.bf16.msra.mxu1 %v1680_v25  ;;  %v3046_v60 = vor.u32 %v3647_v44, %v3045_v51  ;;  %v2981_v1 = vld [vmem:[#allocation5 + $0x420] sm:$0xf]  ;;  %v3437_v25 = vld [vmem:[#allocation5 + $0x7a8] sm:$0xf]  ;;  %v3704_v51 = vld [vmem:[#allocation5 + $0x6ac] sm:$0xf] }
  0xa6   :  { %3466 = vmatmul.msk.bf16.vlgmr.msrb.gmra.mxu0 %vm1651_vm1, %v3958_v42  ;;  %v2469_v11 = vld [vmem:[#allocation5 + $0x20] sm:$0xf]  ;;  %v2982_v13 = vor.u32 %v3631_v2, %v2981_v1  ;;  %v3311_v44 = vld [vmem:[#allocation5 + $0x6e8] sm:$0xf0]  ;;  %v3053_v58 = vld [vmem:[#allocation5 + $0x4a8] sm:$0xf] }
  0xa7   :  { %2031 = vmatpush.bf16.msra.mxu0 %v3238_v23  ;;  %v2470_v54 = vor.u32 %v3503_v12, %v2469_v11  ;;  %v3439_v23 = vld [vmem:[#allocation5 + $0x7e8] sm:$0xf0]  ;;  %v3314_v63 = vor.u32 %v3704_v51, %v3311_v44  ;;  %v3552_v11 = vld [vmem:[#allocation5 + $0x1e4] sm:$0xf0] }
  0xa8   :  { %2017 = vmatpush.bf16.msra.mxu3 %v2790_v15  ;;  %v3175_v15 = vld [vmem:[#allocation5 + $0x5e0] sm:$0xf0]  ;;  %v3442_v31 = vor.u32 %v3736_v21, %v3439_v23  ;;  %v2927_v1 = vld [vmem:[#allocation5 + $0x3e8] sm:$0xf0]  ;;  %v3245_v12 = vld [vmem:[#allocation5 + $0x628] sm:$0xf] }
  0xa9   :  { %2057 = vmatpush.bf16.msra.mxu2 %v2730_v28  ;;  %2067 = vmatpush.bf16.msrb.mxu1 %v3434_v30  ;;  %v3178_v24 = vor.u32 %v3671_v14, %v3175_v15  ;;  %v3600_v28 = vld [vmem:[#allocation5 + $0x364] sm:$0xf0]  ;;  %v1683_v30 = vsel %vm1654_vm0, %v1388_v19, 0  ;;  %v2670_v19 = vor.u32 %v3552_v11, %v2669_v6  ;;  %v3672_v21 = vld [vmem:[#allocation5 + $0x5ac] sm:$0xf] }
  0xaa   :  { %v2862_v32 = vor.u32 %v3600_v28, %v2861_v59  ;;  %v3183_v23 = vld [vmem:[#allocation5 + $0x5e8] sm:$0xf0]  ;;  %v2605_v59 = vld [vmem:[#allocation5 + $0x128] sm:$0xf] }
  0xab   :  { %2032 = vmatpush.bf16.msra.mxu0 %v3174_v33  ;;  %v3438_v33 = vor.u32 %v3744_v22, %v3437_v25  ;;  %v3181_v28 = vld [vmem:[#allocation5 + $0x5a8] sm:$0xf]  ;;  %v3640_v44 = vld [vmem:[#allocation5 + $0x4ac] sm:$0xf] }
  0xac   :  { %2018 = vmatpush.bf16.msra.mxu3 %v2726_v27  ;;  %v3655_v27 = vld [vmem:[#allocation5 + $0x524] sm:$0xf]  ;;  %v3680_v25 = vld [vmem:[#allocation5 + $0x5e4] sm:$0xf0] }
  0xad   :  { %2058 = vmatpush.bf16.msra.mxu2 %v2666_v36  ;;  %2068 = vmatpush.bf16.msrb.mxu1 %v3370_v43  ;;  %v3967_v29 = vpop.f32.mrf.mxu3  ;;  %v2797_v36 = vld [vmem:[#allocation5 + $0x2a8] sm:$0xf]  ;;  %v3114_v38 = vor.u32 %v3655_v27, %v3111_v9  ;;  %v3974_v43 = vld [vmem:[#allocation1] sm:$0xff]  ;;  %v3576_v27 = vld [vmem:[#allocation5 + $0x2ac] sm:$0xf] }
  0xae   :  { %v2799_v9 = vld [vmem:[#allocation5 + $0x2e8] sm:$0xf0]  ;;  %v2989_v6 = vld [vmem:[#allocation5 + $0x428] sm:$0xf] }
  0xaf   :  { %2033 = vmatpush.bf16.msra.mxu0 %v3110_v47  ;;  %v3972_v37 = vpop.f32.mrf.mxu0  ;;  %v2802_v46 = vor.u32 %v3576_v27, %v2799_v9  ;;  %v3593_v27 = vld [vmem:[#allocation5 + $0x334] sm:$0xf] }
  0xb0   :  { %2019 = vmatpush.bf16.msra.mxu3 %v2662_v39  ;;  %v3584_v39 = vld [vmem:[#allocation5 + $0x2e4] sm:$0xf0]  ;;  %v3998_v9 = vld [vmem:[#allocation5 + $0x830] sm:$0xff] }
  0xb1   :  { %2059 = vmatpush.bf16.msra.mxu2 %v2602_v50  ;;  %2069 = vmatpush.bf16.msrb.mxu1 %v3306_v20  ;;  %v2798_v49 = vor.u32 %v3584_v39, %v2797_v36  ;;  %v3374_v50 = vor.u32 %v3728_v41, %v3373_v40  ;;  %v3568_v20 = vld [vmem:[#allocation5 + $0x264] sm:$0xf0]  ;;  %v1118_v36 = vunpack.c.h.b16 %v3962_v52  ;;  %v2735_v52 = vld [vmem:[#allocation5 + $0x268] sm:$0xf0] }
  0xb2   :  { %v3520_v39 = vld [vmem:[#allocation5 + $0xe4] sm:$0xf0] }
  0xb3   :  { %2034 = vmatpush.bf16.msra.mxu0 %v3046_v60  ;;  %v3978_v47 = vpop.f32.mrf.mxu1  ;;  %v3623_v60 = vld [vmem:[#allocation5 + $0x424] sm:$0xf]  ;;  %v3117_v40 = vld [vmem:[#allocation5 + $0x528] sm:$0xf] }
  0xb4   :  { %2020 = vmatpush.bf16.msra.mxu3 %v2598_v53  ;;  %3467 = vmatmul.msk.bf16.vlgmr.msra.gmra.mxu1 %vm1651_vm1, %v3958_v42  ;;  %v2733_v53 = vld [vmem:[#allocation5 + $0x228] sm:$0xf] }
  0xb5   :  { %2060 = vmatpush.bf16.msra.mxu2 %v2538_v0  ;;  %2070 = vmatpush.bf16.msrb.mxu1 %v3242_v10  ;;  %v1740_v62 = vpop.f32.mrf.mxu3  ;;  %v3608_v0 = vld [vmem:[#allocation5 + $0x3ac] sm:$0xf]  ;;  %v2734_v2 = vor.u32 %v3568_v20, %v2733_v53  ;;  %v2986_v10 = vor.u32 %v3623_v60, %v2983_v61  ;;  %v3664_v41 = vld [vmem:[#allocation5 + $0x564] sm:$0xf0]  ;;  %v1390_v20 = vpack.c.b16 %v1118_v36, %v1118_v36 }
  0xb6   :  { %v3983_v7 = vpop.f32.mrf.mxu2  ;;  %v2930_v14 = vor.u32 %v3608_v0, %v2927_v1  ;;  %v3118_v51 = vor.u32 %v3664_v41, %v3117_v40  ;;  %v3055_v53 = vld [vmem:[#allocation5 + $0x4e8] sm:$0xf0]  ;;  %v3648_v60 = vld [vmem:[#allocation5 + $0x4e4] sm:$0xf0]  ;;  %v1119_v40 = vunpack.c.l.b16 %v3998_v9 }
  0xb7   :  { %2035 = vmatpush.bf16.msra.mxu0 %v2982_v13  ;;  %v1714_v8 = vpop.f32.mrf.mxu0  ;;  %v3696_v13 = vld [vmem:[#allocation5 + $0x664] sm:$0xf0]  ;;  %v3544_v62 = vld [vmem:[#allocation5 + $0x1ac] sm:$0xf] }
  0xb8   :  { %2021 = vmatpush.bf16.msra.mxu3 %v2534_v5  ;;  %v3247_v5 = vld [vmem:[#allocation5 + $0x668] sm:$0xf0]  ;;  %v3632_v8 = vld [vmem:[#allocation5 + $0x464] sm:$0xf0] }
  0xb9   :  { %2061 = vmatpush.bf16.msra.mxu2 %v2474_v17  ;;  %2071 = vmatpush.bf16.msrb.mxu1 %v3178_v24  ;;  %v3250_v15 = vor.u32 %v3688_v4, %v3247_v5  ;;  %v3592_v17 = vld [vmem:[#allocation5 + $0x32c] sm:$0xf]  ;;  %v3536_v24 = vld [vmem:[#allocation5 + $0x164] sm:$0xf0]  ;;  %v3054_v4 = vor.u32 %v3648_v60, %v3053_v58  ;;  %v1689_v5 = vsel %vm1654_vm0, %v1390_v20, 0 }
  0xba   :  { %2036 = vmatmul.bf16.vlgmr.msra.gmra.mxu0 %v3980_v55  ;;  %v2671_v0 = vld [vmem:[#allocation5 + $0x1e8] sm:$0xf0] }
  0xbb   :  { %2093 = vmatpush.bf16.msrb.mxu0 %v2926_v18  ;;  %v1727_v16 = vpop.f32.mrf.mxu1  ;;  %v2863_v18 = vld [vmem:[#allocation5 + $0x368] sm:$0xf0] }
  0xbc   :  { %2022 = vmatpush.bf16.msra.mxu3 %v2470_v54  ;;  %2062 = vmatmul.bf16.vlgmr.msra.gmra.mxu2 %v3974_v43  ;;  %v3246_v54 = vor.u32 %v3696_v13, %v3245_v12  ;;  %v2866_v22 = vor.u32 %v3592_v17, %v2863_v18  ;;  %v3624_v1 = vld [vmem:[#allocation5 + $0x42c] sm:$0xf]  ;;  %v3445_v12 = vld [vmem:[#allocation5 + $0x7b0] sm:$0xf]  ;;  %v2935_v16 = vld [vmem:[#allocation5 + $0x3f0] sm:$0xf0] }
  0xbd   :  { %2126 = vmatpush.bf16.msrb.mxu2 %v1686_v26  ;;  %2072 = vmatpush.bf16.msrb.mxu1 %v3114_v38  ;;  %v3186_v26 = vor.u32 %v3672_v21, %v3183_v23  ;;  %v3745_v13 = vld [vmem:[#allocation5 + $0x7ec] sm:$0xf0]  ;;  %v3528_v21 = vld [vmem:[#allocation5 + $0x12c] sm:$0xf] }
  0xbe   :  { %v1766_v38 = vpop.f32.mrf.mxu2  ;;  %v2933_v17 = vld [vmem:[#allocation5 + $0x3b0] sm:$0xf]  ;;  %v2607_v23 = vld [vmem:[#allocation5 + $0x168] sm:$0xf0] }
  0xbf   :  { %2023 = vmatmul.bf16.vlgmr.msra.gmra.mxu3 %v3974_v43  ;;  %2094 = vmatpush.bf16.msrb.mxu0 %v2862_v32  ;;  %v3182_v32 = vor.u32 %v3680_v25, %v3181_v28  ;;  %v3989_v45 = vpop.f32.mrf.mxu0  ;;  %v3617_v18 = vld [vmem:[#allocation5 + $0x3ec] sm:$0xf0]  ;;  %v2543_v36 = vld [vmem:[#allocation5 + $0xe8] sm:$0xf0] }
  0xc0   :  { %2087 = vmatpush.bf16.msrb.mxu3 %v1683_v30  ;;  %v3985_v30 = vpop.f32.mrf.mxu3  ;;  %v3381_v28 = vld [vmem:[#allocation5 + $0x730] sm:$0xf]  ;;  %v3496_v20 = vld [vmem:[#allocation5 + $0x2c] sm:$0xf] }
  0xc1   :  { %2145 = vmatpush.bf16.msra.mxu2 %v3442_v31  ;;  %2073 = vmatpush.bf16.msrb.mxu1 %v3050_v56  ;;  %v2606_v31 = vor.u32 %v3536_v24, %v2605_v59  ;;  %v2477_v56 = vld [vmem:[#allocation5 + $0x28] sm:$0xf]  ;;  %v2990_v59 = vor.u32 %v3632_v8, %v2989_v6  ;;  %v3446_v24 = vor.u32 %v3745_v13, %v3445_v12  ;;  %v3569_v6 = vld [vmem:[#allocation5 + $0x26c] sm:$0xf0] }
  0xc2   :  { %v1765_v8 = vadd.f32 %v3983_v7, %v3985_v30  ;;  %v2677_v30 = vld [vmem:[#allocation5 + $0x1b0] sm:$0xf] }
  0xc3   :  { %2095 = vmatpush.bf16.msrb.mxu0 %v2798_v49  ;;  %v3560_v49 = vld [vmem:[#allocation5 + $0x22c] sm:$0xf] }
  0xc4   :  { %2106 = vmatpush.bf16.msra.mxu3 %v3438_v33  ;;  %v3656_v33 = vld [vmem:[#allocation5 + $0x52c] sm:$0xf]  ;;  %v2738_v61 = vor.u32 %v3560_v49, %v2735_v52  ;;  %v3317_v49 = vld [vmem:[#allocation5 + $0x6b0] sm:$0xf] }
  0xc5   :  { %2146 = vmatpush.bf16.msra.mxu2 %v3378_v48  ;;  %2074 = vmatpush.bf16.msrb.mxu1 %v2986_v10  ;;  %v3122_v48 = vor.u32 %v3656_v33, %v3119_v34  ;;  %v2869_v33 = vld [vmem:[#allocation5 + $0x330] sm:$0xf] }
  0xc6   :  { %v3996_v11 = vpop.f32.mrf.mxu2  ;;  %v3601_v34 = vld [vmem:[#allocation5 + $0x36c] sm:$0xf0] }
  0xc7   :  { %2096 = vmatpush.bf16.msrb.mxu0 %v2734_v2  ;;  %v2991_v2 = vld [vmem:[#allocation5 + $0x468] sm:$0xf0]  ;;  %v3713_v52 = vld [vmem:[#allocation5 + $0x6ec] sm:$0xf0] }
  0xc8   :  { %2107 = vmatpush.bf16.msra.mxu3 %v3374_v50  ;;  %2075 = vmatmul.bf16.vlgmr.msrb.gmra.mxu1 %v3980_v55  ;;  %v2542_v50 = vor.u32 %v3520_v39, %v2541_v35  ;;  %v1753_v10 = vpop.f32.mrf.mxu3  ;;  %v3512_v35 = vld [vmem:[#allocation5 + $0xac] sm:$0xf]  ;;  %v3318_v60 = vor.u32 %v3713_v52, %v3317_v49 }
  0xc9   :  { %2147 = vmatpush.bf16.msra.mxu2 %v3314_v63  ;;  %2132 = vmatpush.bf16.msra.mxu1 %v2930_v14  ;;  %v3058_v63 = vor.u32 %v3640_v44, %v3055_v53  ;;  %v3609_v14 = vld [vmem:[#allocation5 + $0x3b4] sm:$0xf]  ;;  %v2805_v53 = vld [vmem:[#allocation5 + $0x2b0] sm:$0xf] }
  0xca   :  { %v2938_v25 = vor.u32 %v3609_v14, %v2935_v16  ;;  %v2807_v44 = vld [vmem:[#allocation5 + $0x2f0] sm:$0xf0]  ;;  %v3189_v16 = vld [vmem:[#allocation5 + $0x5b0] sm:$0xf] }
  0xcb   :  { %2097 = vmatpush.bf16.msrb.mxu0 %v2670_v19  ;;  %v1779_v19 = vpop.f32.mrf.mxu0  ;;  %v3737_v10 = vld [vmem:[#allocation5 + $0x7b4] sm:$0xf] }
  0xcc   :  { %2108 = vmatpush.bf16.msra.mxu3 %v3310_v3  ;;  %3469 = vmatmul.msk.bf16.vlgmr.msrb.gmra.mxu2 %vm1651_vm1, %v3958_v42  ;;  %v2478_v3 = vor.u32 %v3504_v57, %v2477_v56  ;;  %v3585_v56 = vld [vmem:[#allocation5 + $0x2ec] sm:$0xf0]  ;;  %v2479_v57 = vld [vmem:[#allocation5 + $0x68] sm:$0xf0] }
  0xcd   :  { %2148 = vmatpush.bf16.msra.mxu2 %v3250_v15  ;;  %2133 = vmatpush.bf16.msra.mxu1 %v2866_v22  ;;  %v2674_v15 = vor.u32 %v3544_v62, %v2671_v0  ;;  %v2934_v22 = vor.u32 %v3617_v18, %v2933_v17  ;;  %v3253_v0 = vld [vmem:[#allocation5 + $0x630] sm:$0xf] }
  0xcf   :  { %3468 = vmatmul.msk.bf16.vlgmr.msrb.gmra.mxu3 %vm1651_vm1, %v3958_v42  ;;  %2098 = vmatpush.bf16.msrb.mxu0 %v2606_v31  ;;  %v2610_v31 = vor.u32 %v3528_v21, %v2607_v23  ;;  %v3545_v21 = vld [vmem:[#allocation5 + $0x1b4] sm:$0xf] }
  0xd0   :  { %2109 = vmatpush.bf16.msra.mxu3 %v3246_v54  ;;  %v2994_v54 = vor.u32 %v3624_v1, %v2991_v2  ;;  %v3697_v1 = vld [vmem:[#allocation5 + $0x66c] sm:$0xf0]  ;;  %v3561_v2 = vld [vmem:[#allocation5 + $0x234] sm:$0xf] }
  0xd1   :  { %2149 = vmatpush.bf16.msra.mxu2 %v3186_v26  ;;  %2134 = vmatpush.bf16.msra.mxu1 %v2802_v46  ;;  %v3729_v26 = vld [vmem:[#allocation5 + $0x76c] sm:$0xf0]  ;;  %v1790_v38 = vpop.f32.mrf.mxu1  ;;  %v2870_v46 = vor.u32 %v3601_v34, %v2869_v33  ;;  %v3254_v13 = vor.u32 %v3697_v1, %v3253_v0  ;;  %v2679_v23 = vld [vmem:[#allocation5 + $0x1f0] sm:$0xf0] }
  0xd2   :  { %v3382_v39 = vor.u32 %v3729_v26, %v3381_v28  ;;  %v1778_v28 = vadd.f32 %v3989_v45, %v1765_v8  ;;  %v3383_v33 = vld [vmem:[#allocation5 + $0x770] sm:$0xf0]  ;;  %v3521_v0 = vld [vmem:[#allocation5 + $0xec] sm:$0xf0] }
  0xd3   :  { %2099 = vmatpush.bf16.msrb.mxu0 %v2542_v50  ;;  %v3577_v50 = vld [vmem:[#allocation5 + $0x2b4] sm:$0xf]  ;;  %v1829_v58 = vpop.f32.mrf.mxu0 }
  0xd4   :  { %2110 = vmatpush.bf16.msra.mxu3 %v3182_v32  ;;  %v2871_v32 = vld [vmem:[#allocation5 + $0x370] sm:$0xf0]  ;;  %v2810_v62 = vor.u32 %v3577_v50, %v2807_v44  ;;  %v3649_v44 = vld [vmem:[#allocation5 + $0x4ec] sm:$0xf0] }
  0xd5   :  { %2150 = vmatpush.bf16.msra.mxu2 %v3122_v48  ;;  %2135 = vmatpush.bf16.msra.mxu1 %v2738_v61  ;;  %v2874_v41 = vor.u32 %v3593_v27, %v2871_v32  ;;  %v1818_v48 = vpop.f32.mrf.mxu2  ;;  %v1391_v61 = vpack.c.b16 %v1119_v40, %v1119_v40  ;;  %v3721_v32 = vld [vmem:[#allocation5 + $0x734] sm:$0xf]  ;;  %v2613_v40 = vld [vmem:[#allocation5 + $0x130] sm:$0xf] }
  0xd6   :  { %v3705_v48 = vld [vmem:[#allocation5 + $0x6b4] sm:$0xf] }
  0xd7   :  { %2100 = vmatpush.bf16.msrb.mxu0 %v2478_v3  ;;  %v2482_v3 = vor.u32 %v3496_v20, %v2479_v57  ;;  %v1692_v14 = vsel %vm1654_vm0, %v1391_v61, 0  ;;  %v3319_v50 = vld [vmem:[#allocation5 + $0x6f0] sm:$0xf0]  ;;  %v4015_v61 = vld [vmem:[#allocation5 + $0x838] sm:$0xff] }
  0xd8   :  { %2111 = vmatpush.bf16.msra.mxu3 %v3118_v51  ;;  %v2546_v51 = vor.u32 %v3512_v35, %v2543_v36  ;;  %v3125_v35 = vld [vmem:[#allocation5 + $0x530] sm:$0xf]  ;;  %v3513_v57 = vld [vmem:[#allocation5 + $0xb4] sm:$0xf] }
  0xd9   :  { %2151 = vmatpush.bf16.msra.mxu2 %v3058_v63  ;;  %2136 = vmatpush.bf16.msra.mxu1 %v2674_v15  ;;  %v2806_v63 = vor.u32 %v3585_v56, %v2805_v53  ;;  %v1792_v12 = vpop.f32.mrf.mxu1  ;;  %v3447_v15 = vld [vmem:[#allocation5 + $0x7f0] sm:$0xf0]  ;;  %v3665_v36 = vld [vmem:[#allocation5 + $0x56c] sm:$0xf0] }
  0xda   :  { %2101 = vmatmul.bf16.vlgmr.msrb.gmra.mxu0 %v3974_v43  ;;  %v3126_v52 = vor.u32 %v3665_v36, %v3125_v35  ;;  %v2997_v12 = vld [vmem:[#allocation5 + $0x430] sm:$0xf]  ;;  %v3738_v35 = vld [vmem:[#allocation5 + $0x7bc] sm:$0xf] }
  0xdb   :  { %2165 = vmatpush.bf16.msra.mxu0 %v1689_v5  ;;  %v2741_v5 = vld [vmem:[#allocation5 + $0x230] sm:$0xf]  ;;  %v1831_v26 = vpop.f32.mrf.mxu0 }
  0xdc   :  { %2112 = vmatpush.bf16.msra.mxu3 %v3054_v4  ;;  %v2743_v4 = vld [vmem:[#allocation5 + $0x270] sm:$0xf0]  ;;  %v2742_v18 = vor.u32 %v3569_v6, %v2741_v5 }
  0xdd   :  { %2152 = vmatpush.bf16.msra.mxu2 %v2994_v54  ;;  %2137 = vmatpush.bf16.msra.mxu1 %v2610_v31  ;;  %v2746_v17 = vor.u32 %v3561_v2, %v2743_v4  ;;  %v1842_v19 = vpop.f32.mrf.mxu2  ;;  %v3681_v54 = vld [vmem:[#allocation5 + $0x5ec] sm:$0xf0]  ;;  %v2682_v31 = vor.u32 %v3545_v21, %v2679_v23  ;;  %v3322_v4 = vor.u32 %v3705_v48, %v3319_v50  ;;  %v3689_v5 = vld [vmem:[#allocation5 + $0x634] sm:$0xf]  ;;  %v2359_v21 = vld [vmem:[#allocation7] sm:$0xff] }
  0xde   :  { %v1803_v7 = vpop.f32.mrf.mxu3  ;;  %v3190_v27 = vor.u32 %v3681_v54, %v3189_v16  ;;  %v1120_v54 = vunpack.c.h.b16 %v3998_v9  ;;  %v2485_v23 = vld [vmem:[#allocation5 + $0x30] sm:$0xf]  ;;  %v3657_v48 = vld [vmem:[#allocation5 + $0x534] sm:$0xf] }
  0xdf   :  { %2184 = vmatpush.bf16.msrb.mxu0 %v3446_v24  ;;  %v3553_v24 = vld [vmem:[#allocation5 + $0x1ec] sm:$0xf0] }
  0xe0   :  { %2113 = vmatpush.bf16.msra.mxu3 %v2990_v59  ;;  %2153 = vmatmul.bf16.vlgmr.msra.gmra.mxu2 %v3980_v55  ;;  %v1726_v59 = vadd.f32 %v3978_v47, %v3972_v37  ;;  %v1843_v37 = vadd.f32 %v1842_v19, %v1829_v58  ;;  %v2678_v47 = vor.u32 %v3553_v24, %v2677_v30  ;;  %v2551_v58 = vld [vmem:[#allocation5 + $0xf0] sm:$0xf0] }
  0xe1   :  { %2210 = vmatpush.bf16.msrb.mxu2 %v2938_v25  ;;  %2138 = vmatpush.bf16.msra.mxu1 %v2546_v51  ;;  %v1804_v25 = vadd.f32 %v1803_v7, %v1790_v38  ;;  %v2615_v38 = vld [vmem:[#allocation5 + $0x170] sm:$0xf0]  ;;  %v1855_v49 = vpop.f32.mrf.mxu1  ;;  %v3061_v51 = vld [vmem:[#allocation5 + $0x4b0] sm:$0xf]  ;;  %v2554_v8 = vor.u32 %v3513_v57, %v2551_v58  ;;  %v3586_v57 = vld [vmem:[#allocation5 + $0x2f4] sm:$0xf0] }
  0xe2   :  { %v1739_v45 = vadd.f32 %v3967_v29, %v1726_v59  ;;  %v1856_v29 = vadd.f32 %v1855_v49, %v1843_v37  ;;  %v3062_v6 = vor.u32 %v3649_v44, %v3061_v51  ;;  %v2487_v19 = vld [vmem:[#allocation5 + $0x70] sm:$0xf0]  ;;  %v3505_v59 = vld [vmem:[#allocation5 + $0x6c] sm:$0xf0]  ;;  %v3389_v58 = vld [vmem:[#allocation5 + $0x738] sm:$0xf] }
  0xe3   :  { %2114 = vmatmul.bf16.vlgmr.msra.gmra.mxu3 %v3980_v55  ;;  %2185 = vmatpush.bf16.msrb.mxu0 %v3382_v39  ;;  %v1817_v34 = vadd.f32 %v3996_v11, %v1804_v25  ;;  %v3529_v39 = vld [vmem:[#allocation5 + $0x134] sm:$0xf]  ;;  %v3386_v11 = vor.u32 %v3721_v32, %v3383_v33  ;;  %v3618_v25 = vld [vmem:[#allocation5 + $0x3f4] sm:$0xf0]  ;;  %v2486_v37 = vor.u32 %v3505_v59, %v2485_v23  ;;  %v3690_v23 = vld [vmem:[#allocation5 + $0x63c] sm:$0xf] }
  0xe4   :  { %2171 = vmatpush.bf16.msrb.mxu3 %v2934_v22  ;;  %v3450_v22 = vor.u32 %v3737_v10, %v3447_v15  ;;  %v2618_v56 = vor.u32 %v3529_v39, %v2615_v38  ;;  %v3255_v10 = vld [vmem:[#allocation5 + $0x670] sm:$0xf0]  ;;  %v3455_v39 = vld [vmem:[#allocation5 + $0x7f8] sm:$0xf0]  ;;  %v3602_v38 = vld [vmem:[#allocation5 + $0x374] sm:$0xf0] }
  0xe5   :  { %2211 = vmatpush.bf16.msrb.mxu2 %v2874_v41  ;;  %2139 = vmatpush.bf16.msra.mxu1 %v2482_v3  ;;  %v3537_v41 = vld [vmem:[#allocation5 + $0x16c] sm:$0xf0]  ;;  %v3477_v53 = vclamps-f32 %v1817_v34, 1.0  ;;  %v3478_v3 = vclamps-f32 %v1856_v29, 1.0  ;;  %v3258_v24 = vor.u32 %v3689_v5, %v3255_v10  ;;  %v3673_v32 = vld [vmem:[#allocation5 + $0x5b4] sm:$0xf]  ;;  %v3458_v50 = vor.u32 %v3738_v35, %v3455_v39 }
  0xe6   :  { %v2614_v20 = vor.u32 %v3537_v41, %v2613_v40  ;;  %v1805_v1 = vpop.f32.mrf.mxu3  ;;  %v3191_v33 = vld [vmem:[#allocation5 + $0x5f0] sm:$0xf0]  ;;  %v3453_v41 = vld [vmem:[#allocation5 + $0x7b8] sm:$0xf]  ;;  %v3391_v29 = vld [vmem:[#allocation5 + $0x778] sm:$0xf0] }
  0xe7   :  { %2186 = vmatpush.bf16.msrb.mxu0 %v3318_v60  ;;  %v1844_v60 = vpop.f32.mrf.mxu2  ;;  %v2380_v15 = vrot.slane %v3477_v53, 4  ;;  %v2381_v16 = vrot.slane %v3478_v3, 2  ;;  %v3194_v40 = vor.u32 %v3673_v32, %v3191_v33  ;;  %v3127_v49 = vld [vmem:[#allocation5 + $0x570] sm:$0xf0]  ;;  %v3722_v53 = vld [vmem:[#allocation5 + $0x73c] sm:$0xf] }
  0xe8   :  { %2172 = vmatpush.bf16.msrb.mxu3 %v2870_v46  ;;  %2140 = vmatmul.bf16.vlgmr.msra.gmra.mxu1 %v3974_v43  ;;  %v3476_v46 = vclamps-f32 %v1778_v28, 1.0  ;;  %v2941_v28 = vld [vmem:[#allocation5 + $0x3b8] sm:$0xf]  ;;  %v3394_v1 = vor.u32 %v3722_v53, %v3391_v29  ;;  %v3327_v5 = vld [vmem:[#allocation5 + $0x6f8] sm:$0xf0] }
  0xe9   :  { %2212 = vmatpush.bf16.msrb.mxu2 %v2810_v62  ;;  %2204 = vmatpush.bf16.msrb.mxu1 %v1692_v14  ;;  %v3475_v62 = vclamps-f32 %v1739_v45, 1.0  ;;  %v1121_v14 = vunpack.c.l.b16 %v4015_v61  ;;  %v2394_v30 = vsel %vm2393_vm3, %v2380_v15, %v2381_v16  ;;  %v1857_v26 = vpop.f32.mrf.mxu1  ;;  %v2942_v36 = vor.u32 %v3618_v25, %v2941_v28  ;;  %v2877_v45 = vld [vmem:[#allocation5 + $0x338] sm:$0xf]  ;;  %v3625_v15 = vld [vmem:[#allocation5 + $0x434] sm:$0xf] }
  0xea   :  { %3470 = vmatmul.msk.bf16.vlgmr.msra.gmra.mxu0 %vm1651_vm1, %v3958_v42  ;;  %v2379_v2 = vrot.slane %v3476_v46, 6  ;;  %v3746_v46 = vld [vmem:[#allocation5 + $0x7f4] sm:$0xf0]  ;;  %v2878_v51 = vor.u32 %v3602_v38, %v2877_v45  ;;  %v2999_v16 = vld [vmem:[#allocation5 + $0x470] sm:$0xf0] }
  0xeb   :  { %2187 = vmatpush.bf16.msrb.mxu0 %v3254_v13  ;;  %v3633_v13 = vld [vmem:[#allocation5 + $0x46c] sm:$0xf0]  ;;  %v1393_v9 = vpack.c.b16 %v1121_v14, %v1121_v14  ;;  %v3454_v44 = vor.u32 %v3746_v46, %v3453_v41  ;;  %v3730_v60 = vld [vmem:[#allocation5 + $0x774] sm:$0xf0]  ;;  %v3263_v59 = vld [vmem:[#allocation5 + $0x678] sm:$0xf0] }
  0xec   :  { %2173 = vmatpush.bf16.msrb.mxu3 %v2806_v63  ;;  %v2549_v63 = vld [vmem:[#allocation5 + $0xb0] sm:$0xf]  ;;  %v2392_v7 = vsel %vm2391_vm2, %v3475_v62, %v2379_v2  ;;  %v3390_v3 = vor.u32 %v3730_v60, %v3389_v58  ;;  %v3570_v10 = vld [vmem:[#allocation5 + $0x274] sm:$0xf0]  ;;  %v3266_v32 = vor.u32 %v3690_v23, %v3263_v59  ;;  %v3594_v33 = vld [vmem:[#allocation5 + $0x33c] sm:$0xf]  ;;  %v1122_v60 = vunpack.c.h.b16 %v4015_v61 }
  0xed   :  { %2213 = vmatpush.bf16.msrb.mxu2 %v2746_v17  ;;  %2223 = vmatpush.bf16.msra.mxu1 %v3450_v22  ;;  %v2550_v17 = vor.u32 %v3521_v0, %v2549_v63  ;;  %v2395_v22 = vsel %vm1654_vm0, %v2392_v7, %v2394_v30  ;;  %v3641_v63 = vld [vmem:[#allocation5 + $0x4b4] sm:$0xf]  ;;  %v2685_v7 = vld [vmem:[#allocation5 + $0x1b8] sm:$0xf]  ;;  %v3199_v35 = vld [vmem:[#allocation5 + $0x5f8] sm:$0xf0] }
  0xee   :  { %v2409_v34 = vadd.f32 %v2395_v22, %v2359_v21  ;;  %v3063_v0 = vld [vmem:[#allocation5 + $0x4f0] sm:$0xf0]  ;;  %v3554_v28 = vld [vmem:[#allocation5 + $0x1f4] sm:$0xf0] }
  0xef   :  { %2188 = vmatpush.bf16.msrb.mxu0 %v3190_v27  ;;  %v2998_v27 = vor.u32 %v3633_v13, %v2997_v12  ;;  %v3325_v12 = vld [vmem:[#allocation5 + $0x6b8] sm:$0xf] }
  0xf0   :  { %2174 = vmatpush.bf16.msrb.mxu3 %v2742_v18  ;;  %v3497_v18 = vld [vmem:[#allocation5 + $0x34] sm:$0xf]  ;;  %2413 = vst [vmem:[#allocation8] sm:$0xff] %v2409_v34  ;;  %v3714_v13 = vld [vmem:[#allocation5 + $0x6f4] sm:$0xf0]  ;;  %v2686_v34 = vor.u32 %v3554_v28, %v2685_v7 }
  0xf1   :  { %2214 = vmatpush.bf16.msrb.mxu2 %v2682_v31  ;;  %2224 = vmatpush.bf16.msra.mxu1 %v3386_v11  ;;  %v2490_v31 = vor.u32 %v3497_v18, %v2487_v19  ;;  %v1698_v11 = vsel %vm1654_vm0, %v1393_v9, 0  ;;  %v4028_v62 = vpop.f32.mrf.mxu1  ;;  %v3610_v18 = vld [vmem:[#allocation5 + $0x3bc] sm:$0xf]  ;;  %v3326_v21 = vor.u32 %v3714_v13, %v3325_v12  ;;  %v3261_v25 = vld [vmem:[#allocation5 + $0x638] sm:$0xf]  ;;  %v1394_v13 = vpack.c.b16 %v1122_v60, %v1122_v60 }
  0xf2   :  { %v2943_v19 = vld [vmem:[#allocation5 + $0x3f8] sm:$0xf0]  ;;  %v3698_v22 = vld [vmem:[#allocation5 + $0x674] sm:$0xf0] }
  0xf3   :  { %2189 = vmatpush.bf16.msrb.mxu0 %v3126_v52  ;;  %v4031_v14 = vpop.f32.mrf.mxu0  ;;  %v2879_v9 = vld [vmem:[#allocation5 + $0x378] sm:$0xf0]  ;;  %v3538_v39 = vld [vmem:[#allocation5 + $0x174] sm:$0xf0]  ;;  %v1701_v28 = vsel %vm1654_vm0, %v1394_v13, 0 }
  0xf4   :  { %2175 = vmatpush.bf16.msrb.mxu3 %v2678_v47  ;;  %v1392_v47 = vpack.c.b16 %v1120_v54, %v1120_v54  ;;  %v3197_v45 = vld [vmem:[#allocation5 + $0x5b8] sm:$0xf]  ;;  %v2882_v41 = vor.u32 %v3594_v33, %v2879_v9  ;;  %v2623_v33 = vld [vmem:[#allocation5 + $0x178] sm:$0xf0] }
  0xf5   :  { %2215 = vmatpush.bf16.msrb.mxu2 %v2618_v56  ;;  %2225 = vmatpush.bf16.msra.mxu1 %v3322_v4  ;;  %v2813_v56 = vld [vmem:[#allocation5 + $0x2b8] sm:$0xf]  ;;  %v3706_v4 = vld [vmem:[#allocation5 + $0x6bc] sm:$0xf] }
  0xf6   :  { %v1695_v52 = vsel %vm1654_vm0, %v1392_v47, 0  ;;  %v2814_v2 = vor.u32 %v3586_v57, %v2813_v56  ;;  %v3674_v47 = vld [vmem:[#allocation5 + $0x5bc] sm:$0xf]  ;;  %v3682_v38 = vld [vmem:[#allocation5 + $0x5f4] sm:$0xf0] }
  0xf7   :  { %2190 = vmatpush.bf16.msrb.mxu0 %v3062_v6  ;;  %v2749_v6 = vld [vmem:[#allocation5 + $0x238] sm:$0xf]  ;;  %v3202_v46 = vor.u32 %v3674_v47, %v3199_v35  ;;  %v2559_v47 = vld [vmem:[#allocation5 + $0xf8] sm:$0xf0] }
  0xf8   :  { %2176 = vmatpush.bf16.msrb.mxu3 %v2614_v20  ;;  %3471 = vmatmul.msk.bf16.vlgmr.msrb.gmra.mxu1 %vm1651_vm1, %v3958_v42  ;;  %v3130_v20 = vor.u32 %v3657_v48, %v3127_v49  ;;  %v2750_v54 = vor.u32 %v3570_v10, %v2749_v6  ;;  %v2815_v48 = vld [vmem:[#allocation5 + $0x2f8] sm:$0xf0]  ;;  %v3522_v29 = vld [vmem:[#allocation5 + $0xf4] sm:$0xf0] }
  0xf9   :  { %2216 = vmatpush.bf16.msrb.mxu2 %v2554_v8  ;;  %2226 = vmatpush.bf16.msra.mxu1 %v3258_v24  ;;  %v3066_v8 = vor.u32 %v3641_v63, %v3063_v0  ;;  %v3002_v24 = vor.u32 %v3625_v15, %v2999_v16  ;;  %v3133_v56 = vld [vmem:[#allocation5 + $0x538] sm:$0xf]  ;;  %v3071_v6 = vld [vmem:[#allocation5 + $0x4f8] sm:$0xf0] }
  0xfa   :  { %v3506_v10 = vld [vmem:[#allocation5 + $0x74] sm:$0xf0] }
  0xfb   :  { %2191 = vmatpush.bf16.msrb.mxu0 %v2998_v27  ;;  %v4033_v30 = vpop.f32.mrf.mxu2  ;;  %v1896_v27 = vpop.f32.mrf.mxu1  ;;  %v3650_v12 = vld [vmem:[#allocation5 + $0x4f4] sm:$0xf0] }
  0xfc   :  { %2177 = vmatpush.bf16.msrb.mxu3 %v2550_v17  ;;  %v3330_v17 = vor.u32 %v3706_v4, %v3327_v5  ;;  %v3642_v5 = vld [vmem:[#allocation5 + $0x4bc] sm:$0xf]  ;;  %v3005_v23 = vld [vmem:[#allocation5 + $0x438] sm:$0xf] }
  0xfd   :  { %2217 = vmatpush.bf16.msrb.mxu2 %v2490_v31  ;;  %2227 = vmatpush.bf16.msra.mxu1 %v3194_v40  ;;  %v2946_v31 = vor.u32 %v3610_v18, %v2943_v19  ;;  %v1883_v40 = vpop.f32.mrf.mxu0  ;;  %v3074_v15 = vor.u32 %v3642_v5, %v3071_v6  ;;  %v3546_v18 = vld [vmem:[#allocation5 + $0x1bc] sm:$0xf]  ;;  %v3634_v59 = vld [vmem:[#allocation5 + $0x474] sm:$0xf0] }
  0xfe   :  { %2192 = vmatmul.bf16.vlgmr.msrb.gmra.mxu0 %v3980_v55  ;;  %v4035_v26 = vpop.f32.mrf.mxu3  ;;  %v2687_v19 = vld [vmem:[#allocation5 + $0x1f8] sm:$0xf0] }
  0xff   :  { %2249 = vmatpush.bf16.msra.mxu0 %v2942_v36  ;;  %v2621_v36 = vld [vmem:[#allocation5 + $0x138] sm:$0xf] }
 0x100   :  { %2178 = vmatpush.bf16.msrb.mxu3 %v2486_v37  ;;  %2218 = vmatmul.bf16.vlgmr.msrb.gmra.mxu2 %v3974_v43  ;;  %v3262_v37 = vor.u32 %v3698_v22, %v3261_v25  ;;  %v2622_v49 = vor.u32 %v3538_v39, %v2621_v36  ;;  %v2690_v22 = vor.u32 %v3546_v18, %v2687_v19 }
 0x101   :  { %2282 = vmatpush.bf16.msra.mxu2 %v1698_v11  ;;  %2228 = vmatpush.bf16.msra.mxu1 %v3130_v20  ;;  %v3578_v11 = vld [vmem:[#allocation5 + $0x2bc] sm:$0xf]  ;;  %v3666_v20 = vld [vmem:[#allocation5 + $0x574] sm:$0xf0] }
 0x102   :  { %v2818_v63 = vor.u32 %v3578_v11, %v2815_v48  ;;  %v3134_v4 = vor.u32 %v3666_v20, %v3133_v56 }
 0x103   :  { %2179 = vmatmul.bf16.vlgmr.msrb.gmra.mxu3 %v3974_v43  ;;  %2250 = vmatpush.bf16.msra.mxu0 %v2878_v51  ;;  %v3135_v51 = vld [vmem:[#allocation5 + $0x578] sm:$0xf0]  ;;  %v1909_v53 = vpop.f32.mrf.mxu2  ;;  %v4042_v58 = vpop.f32.mrf.mxu1 }
 0x104   :  { %2243 = vmatpush.bf16.msra.mxu3 %v1695_v52  ;;  %v3198_v52 = vor.u32 %v3682_v38, %v3197_v45  ;;  %v3498_v45 = vld [vmem:[#allocation5 + $0x3c] sm:$0xf] }
 0x105   :  { %2301 = vmatpush.bf16.msrb.mxu2 %v3458_v50  ;;  %2229 = vmatpush.bf16.msra.mxu1 %v3066_v8  ;;  %v3658_v50 = vld [vmem:[#allocation5 + $0x53c] sm:$0xf]  ;;  %v2493_v8 = vld [vmem:[#allocation5 + $0x38] sm:$0xf] }
 0x106   :  { %v1870_v57 = vpop.f32.mrf.mxu3  ;;  %v3138_v0 = vor.u32 %v3658_v50, %v3135_v51  ;;  %v2494_v16 = vor.u32 %v3506_v10, %v2493_v8  ;;  %v2495_v38 = vld [vmem:[#allocation5 + $0x78] sm:$0xf0]  ;;  %v1882_v50 = vadd.f32 %v4031_v14, %v4035_v26 }
 0x107   :  { %2251 = vmatpush.bf16.msra.mxu0 %v2814_v2  ;;  %v2751_v2 = vld [vmem:[#allocation5 + $0x278] sm:$0xf0] }
 0x108   :  { %2262 = vmatpush.bf16.msrb.mxu3 %v3454_v44  ;;  %v2557_v44 = vld [vmem:[#allocation5 + $0xb8] sm:$0xf] }
 0x109   :  { %2302 = vmatpush.bf16.msrb.mxu2 %v3394_v1  ;;  %2230 = vmatpush.bf16.msra.mxu1 %v3002_v24  ;;  %v3562_v1 = vld [vmem:[#allocation5 + $0x23c] sm:$0xf] }
 0x10a   :  { %v2754_v61 = vor.u32 %v3562_v1, %v2751_v2  ;;  %v2360_v2 = vld [vmem:[#allocation7 + $0x8] sm:$0xff] }
 0x10b   :  { %2252 = vmatpush.bf16.msra.mxu0 %v2750_v54  ;;  %v3626_v54 = vld [vmem:[#allocation5 + $0x43c] sm:$0xf]  ;;  %v1972_v7 = vpop.f32.mrf.mxu2  ;;  %v1922_v25 = vpop.f32.mrf.mxu1 }
 0x10c   :  { %2263 = vmatpush.bf16.msrb.mxu3 %v3390_v3  ;;  %2231 = vmatmul.bf16.vlgmr.msra.gmra.mxu1 %v3980_v55  ;;  %v2558_v3 = vor.u32 %v3522_v29, %v2557_v44 }
 0x10d   :  { %2303 = vmatpush.bf16.msrb.mxu2 %v3330_v17  ;;  %2288 = vmatpush.bf16.msrb.mxu1 %v2946_v31  ;;  %v3006_v31 = vor.u32 %v3634_v59, %v3005_v23 }
 0x10e   :  { %v1933_v24 = vpop.f32.mrf.mxu3 }
 0x10f   :  { %2253 = vmatpush.bf16.msra.mxu0 %v2686_v34 }
 0x110   :  { %2264 = vmatpush.bf16.msrb.mxu3 %v3326_v21  ;;  %3473 = vmatmul.msk.bf16.vlgmr.msra.gmra.mxu2 %vm1651_vm1, %v3958_v42  ;;  %v3007_v21 = vld [vmem:[#allocation5 + $0x478] sm:$0xf0] }
 0x111   :  { %2304 = vmatpush.bf16.msrb.mxu2 %v3266_v32  ;;  %2289 = vmatpush.bf16.msrb.mxu1 %v2882_v41  ;;  %v3010_v27 = vor.u32 %v3626_v54, %v3007_v21  ;;  %v3530_v32 = vld [vmem:[#allocation5 + $0x13c] sm:$0xf]  ;;  %v2498_v41 = vor.u32 %v3498_v45, %v2495_v38 }
 0x112   :  { %v2626_v34 = vor.u32 %v3530_v32, %v2623_v33 }
 0x113   :  { %3472 = vmatmul.msk.bf16.vlgmr.msra.gmra.mxu3 %vm1651_vm1, %v3958_v42  ;;  %2254 = vmatpush.bf16.msra.mxu0 %v2622_v49  ;;  %v3069_v42 = vld [vmem:[#allocation5 + $0x4b8] sm:$0xf]  ;;  %v1946_v9 = vpop.f32.mrf.mxu0  ;;  %v1974_v35 = vpop.f32.mrf.mxu2 }
 0x114   :  { %2265 = vmatpush.bf16.msrb.mxu3 %v3262_v37  ;;  %v3070_v17 = vor.u32 %v3650_v12, %v3069_v42  ;;  %v3514_v37 = vld [vmem:[#allocation5 + $0xbc] sm:$0xf] }
 0x115   :  { %2305 = vmatpush.bf16.msrb.mxu2 %v3202_v46  ;;  %2290 = vmatpush.bf16.msrb.mxu1 %v2818_v63  ;;  %v2562_v39 = vor.u32 %v3514_v37, %v2559_v47  ;;  %v1921_v46 = vadd.f32 %v4042_v58, %v4033_v30  ;;  %v1895_v30 = vadd.f32 %v4028_v62, %v1882_v50 }
 0x116   :  { %v1935_v36 = vpop.f32.mrf.mxu3 }
 0x117   :  { %2255 = vmatpush.bf16.msra.mxu0 %v2558_v3  ;;  %v1934_v49 = vadd.f32 %v1933_v24, %v1921_v46  ;;  %v3479_v1 = vclamps-f32 %v1895_v30, 1.0 }
 0x118   :  { %2266 = vmatpush.bf16.msrb.mxu3 %v3198_v52 }
 0x119   :  { %2306 = vmatpush.bf16.msrb.mxu2 %v3138_v0  ;;  %2291 = vmatpush.bf16.msrb.mxu1 %v2754_v61  ;;  %v3480_v53 = vclamps-f32 %v1934_v49, 1.0 }
 0x11b   :  { %2256 = vmatpush.bf16.msra.mxu0 %v2494_v16  ;;  %v1948_v40 = vpop.f32.mrf.mxu0  ;;  %v2382_v63 = vrot.slane %v3480_v53, 6 }
 0x11c   :  { %2267 = vmatpush.bf16.msrb.mxu3 %v3134_v4 }
 0x11d   :  { %2307 = vmatpush.bf16.msrb.mxu2 %v3074_v15  ;;  %2292 = vmatpush.bf16.msrb.mxu1 %v2690_v22  ;;  %v2396_v3 = vsel %vm2391_vm2, %v3479_v1, %v2382_v63 }
 0x11e   :  { %2257 = vmatmul.bf16.vlgmr.msra.gmra.mxu0 %v3974_v43 }
 0x11f   :  { %2321 = vmatpush.bf16.msrb.mxu0 %v1701_v28  ;;  %v1998_v11 = vpop.f32.mrf.mxu2 }
 0x120   :  { %2268 = vmatpush.bf16.msrb.mxu3 %v3070_v17 }
 0x121   :  { %2308 = vmatpush.bf16.msrb.mxu2 %v3010_v27  ;;  %2293 = vmatpush.bf16.msrb.mxu1 %v2626_v34  ;;  %v1985_v44 = vpop.f32.mrf.mxu1 }
 0x122   :  { %v1959_v48 = vpop.f32.mrf.mxu3  ;;  %v1999_v29 = vadd.f32 %v1998_v11, %v1985_v44 }
 0x123   :  { %v1960_v52 = vadd.f32 %v1959_v48, %v1946_v9  ;;  %v2011_v56 = vpop.f32.mrf.mxu0  ;;  %v2361_v48 = vld [vmem:[#allocation7 + $0x10] sm:$0xff] }
 0x124   :  { %2269 = vmatpush.bf16.msrb.mxu3 %v3006_v31  ;;  %2309 = vmatmul.bf16.vlgmr.msrb.gmra.mxu2 %v3980_v55  ;;  %v2012_v57 = vadd.f32 %v2011_v56, %v1999_v29 }
 0x125   :  { %2294 = vmatpush.bf16.msrb.mxu1 %v2562_v39  ;;  %v1973_v51 = vadd.f32 %v1972_v7, %v1960_v52 }
 0x126   :  { %v3482_v0 = vclamps-f32 %v2012_v57, 1.0 }
 0x127   :  { %2270 = vmatmul.bf16.vlgmr.msrb.gmra.mxu3 %v3980_v55  ;;  %v3756_v55 = vld [vmem:[#allocation1 + $0x12] sm:$0xff]  ;;  %v3481_v20 = vclamps-f32 %v1973_v51, 1.0  ;;  %v2000_v58 = vpop.f32.mrf.mxu2 }
 0x128   :  { %v2384_v26 = vrot.slane %v3482_v0, 2 }
 0x129   :  { %2295 = vmatpush.bf16.msrb.mxu1 %v2498_v41  ;;  %v2383_v14 = vrot.slane %v3481_v20, 4 }
 0x12a   :  { %v1961_v60 = vpop.f32.mrf.mxu3 }
 0x12b   :  { %v2397_v4 = vsel %vm2393_vm3, %v2383_v14, %v2384_v26  ;;  %v2013_v5 = vpop.f32.mrf.mxu0 }
 0x12c   :  { %2296 = vmatmul.bf16.vlgmr.msrb.gmra.mxu1 %v3974_v43  ;;  %v1987_v43 = vpop.f32.mrf.mxu1  ;;  %v2398_v6 = vsel %vm1654_vm0, %v2396_v3, %v2397_v4 }
 0x12d   :  { %v2410_v8 = vadd.f32 %v2398_v6, %v2360_v2 }
 0x12e   :  { %3474 = vmatmul.msk.bf16.vlgmr.msrb.gmra.mxu0 %vm1651_vm1, %v3756_v55 }
 0x12f   :  { %2414 = vst [vmem:[#allocation8 + $0x8] sm:$0xff] %v2410_v8 }
 0x134   :  { %v2050_v62 = vpop.f32.mrf.mxu1 }
 0x137   :  { %v2037_v10 = vpop.f32.mrf.mxu0 }
 0x13c   :  { %v2052_v12 = vpop.f32.mrf.mxu1 }
 0x13f   :  { %v2063_v42 = vpop.f32.mrf.mxu2  ;;  %v2039_v61 = vpop.f32.mrf.mxu0 }
 0x142   :  { %v2024_v13 = vpop.f32.mrf.mxu3 }
 0x143   :  { %v2038_v31 = vadd.f32 %v2037_v10, %v2024_v13 }
 0x145   :  { %v2076_v17 = vpop.f32.mrf.mxu1  ;;  %v2051_v35 = vadd.f32 %v2050_v62, %v2038_v31 }
 0x146   :  { %v2077_v28 = vadd.f32 %v2076_v17, %v2063_v42 }
 0x147   :  { %v2065_v15 = vpop.f32.mrf.mxu2  ;;  %v3483_v41 = vclamps-f32 %v2051_v35, 1.0 }
 0x14a   :  { %v2026_v16 = vpop.f32.mrf.mxu3 }
 0x14d   :  { %v2078_v54 = vpop.f32.mrf.mxu1 }
 0x14f   :  { %v2128_v18 = vpop.f32.mrf.mxu2 }
 0x152   :  { %v2089_v19 = vpop.f32.mrf.mxu3 }
 0x153   :  { %v2090_v27 = vadd.f32 %v2089_v19, %v2077_v28  ;;  %v2362_v28 = vld [vmem:[#allocation7 + $0x18] sm:$0xff] }
 0x155   :  { %v3484_v9 = vclamps-f32 %v2090_v27, 1.0 }
 0x157   :  { %v2102_v21 = vpop.f32.mrf.mxu0  ;;  %v2130_v23 = vpop.f32.mrf.mxu2  ;;  %v2385_v38 = vrot.slane %v3484_v9, 6 }
 0x159   :  { %v2399_v52 = vsel %vm2391_vm2, %v3483_v41, %v2385_v38 }
 0x15a   :  { %v2091_v59 = vpop.f32.mrf.mxu3 }
 0x15f   :  { %v2104_v7 = vpop.f32.mrf.mxu0 }
 0x163   :  { %v2154_v24 = vpop.f32.mrf.mxu2 }
 0x165   :  { %v2141_v33 = vpop.f32.mrf.mxu1 }
 0x166   :  { %v2115_v25 = vpop.f32.mrf.mxu3  ;;  %v2155_v34 = vadd.f32 %v2154_v24, %v2141_v33 }
 0x167   :  { %v2116_v22 = vadd.f32 %v2115_v25, %v2102_v21  ;;  %v2167_v37 = vpop.f32.mrf.mxu0 }
 0x168   :  { %v2168_v39 = vadd.f32 %v2167_v37, %v2155_v34 }
 0x169   :  { %v2129_v32 = vadd.f32 %v2128_v18, %v2116_v22 }
 0x16a   :  { %v3486_v40 = vclamps-f32 %v2168_v39, 1.0 }
 0x16b   :  { %v2156_v47 = vpop.f32.mrf.mxu2  ;;  %v3485_v36 = vclamps-f32 %v2129_v32, 1.0 }
 0x16c   :  { %v2387_v11 = vrot.slane %v3486_v40, 2 }
 0x16d   :  { %v2386_v46 = vrot.slane %v3485_v36, 4  ;;  %v2143_v49 = vpop.f32.mrf.mxu1 }
 0x16e   :  { %v2117_v45 = vpop.f32.mrf.mxu3 }
 0x16f   :  { %v2400_v50 = vsel %vm2393_vm3, %v2386_v46, %v2387_v11  ;;  %v2169_v51 = vpop.f32.mrf.mxu0 }
 0x170   :  { %v2401_v55 = vsel %vm1654_vm0, %v2399_v52, %v2400_v50 }
 0x171   :  { %v2411_v44 = vadd.f32 %v2401_v55, %v2361_v48 }
 0x173   :  { %2415 = vst [vmem:[#allocation8 + $0x10] sm:$0xff] %v2411_v44 }
 0x175   :  { %v2206_v53 = vpop.f32.mrf.mxu1 }
 0x17b   :  { %v2193_v29 = vpop.f32.mrf.mxu0 }
 0x17d   :  { %v2208_v20 = vpop.f32.mrf.mxu1 }
 0x183   :  { %v2219_v56 = vpop.f32.mrf.mxu2  ;;  %v2195_v57 = vpop.f32.mrf.mxu0 }
 0x186   :  { %v2180_v30 = vpop.f32.mrf.mxu3 }
 0x187   :  { %v2194_v10 = vadd.f32 %v2193_v29, %v2180_v30 }
 0x189   :  { %v2232_v63 = vpop.f32.mrf.mxu1  ;;  %v2207_v18 = vadd.f32 %v2206_v53, %v2194_v10 }
 0x18a   :  { %v2233_v6 = vadd.f32 %v2232_v63, %v2219_v56 }
 0x18b   :  { %v2221_v58 = vpop.f32.mrf.mxu2  ;;  %v3487_v59 = vclamps-f32 %v2207_v18, 1.0 }
 0x18e   :  { %v2182_v60 = vpop.f32.mrf.mxu3 }
 0x191   :  { %v2234_v14 = vpop.f32.mrf.mxu1 }
 0x193   :  { %v2284_v0 = vpop.f32.mrf.mxu2 }
 0x196   :  { %v2245_v1 = vpop.f32.mrf.mxu3 }
 0x197   :  { %v2246_v62 = vadd.f32 %v2245_v1, %v2233_v6 }
 0x199   :  { %v3488_v61 = vclamps-f32 %v2246_v62, 1.0 }
 0x19b   :  { %v2258_v26 = vpop.f32.mrf.mxu0  ;;  %v2286_v2 = vpop.f32.mrf.mxu2  ;;  %v2388_v21 = vrot.slane %v3488_v61, 6 }
 0x19d   :  { %v2402_v27 = vsel %vm2391_vm2, %v3487_v59, %v2388_v21 }
 0x19e   :  { %v2247_v43 = vpop.f32.mrf.mxu3 }
 0x1a3   :  { %v2260_v3 = vpop.f32.mrf.mxu0 }
 0x1a7   :  { %v2310_v4 = vpop.f32.mrf.mxu2 }
 0x1a9   :  { %v2297_v12 = vpop.f32.mrf.mxu1 }
 0x1aa   :  { %v2271_v5 = vpop.f32.mrf.mxu3  ;;  %v2311_v15 = vadd.f32 %v2310_v4, %v2297_v12 }
 0x1ab   :  { %v2272_v8 = vadd.f32 %v2271_v5, %v2258_v26  ;;  %v2323_v13 = vpop.f32.mrf.mxu0 }
 0x1ac   :  { %v2324_v54 = vadd.f32 %v2323_v13, %v2311_v15 }
 0x1ad   :  { %v2285_v42 = vadd.f32 %v2284_v0, %v2272_v8 }
 0x1ae   :  { %v3490_v23 = vclamps-f32 %v2324_v54, 1.0 }
 0x1af   :  { %v2312_v16 = vpop.f32.mrf.mxu2  ;;  %v3489_v19 = vclamps-f32 %v2285_v42, 1.0 }
 0x1b0   :  { %v2390_v24 = vrot.slane %v3490_v23, 2 }
 0x1b1   :  { %v2389_v7 = vrot.slane %v3489_v19, 4  ;;  %v2299_v25 = vpop.f32.mrf.mxu1 }
 0x1b2   :  { %v2273_v17 = vpop.f32.mrf.mxu3 }
 0x1b3   :  { %v2325_v22 = vpop.f32.mrf.mxu0  ;;  %v2403_v31 = vsel %vm2393_vm3, %v2389_v7, %v2390_v24 }
 0x1b4   :  { %v2404_v32 = vsel %vm1654_vm0, %v2402_v27, %v2403_v31 }
 0x1b5   :  { %v2412_v33 = vadd.f32 %v2404_v32, %v2362_v28 }
 0x1b7   :  { %2416 = vst [vmem:[#allocation8 + $0x18] sm:$0xff] %v2412_v33 }
 0x1b8   :  { %2427 = dma.vmem_to_hbm [thread:$0]  %s2423_s2, 512, %s2425_s30, [#allocation4]  }
 0x1b9   :  { %3857 = dma.done.wait [#allocation4], 512  }
 0x1ba   :  { %3858 = vsyncadd [#allocation4], 4294966784 }
 0x1bb   :  { %2432 = vsyncpa [#allocation3], 1 }
 0x1bc   :  { %2433 = vsyncpa [#allocation6], 1 }
 0x1bd   :  { %2434 = vsyncpa [#allocation4], 1 }

</bundles_post_ra>
